<compile_context>
chip_gen: v6e
topology: v6e:2x2x1
jax: 0.10.0
libtpu: 0.0.40
codegen_flags: <defaults>
</compile_context>

<pallas_src>
import functools
import math

import jax
import jax.numpy as jnp
from jax.experimental import pallas as pl
from jax.experimental.pallas import tpu as pltpu

DIAG_NOISE = 0.1


def _round_up(x, m):
    return (x + m - 1) // m * m


# ----------------------------------------------------------------------------
# Kernel 1: fused 3x3 'SAME' conv + bias + ReLU (shifted-window matmuls).
#   Padded NHWC image flattened to (Lp, Cin); each tap (dh, dw) is a contiguous
#   window of M = H*(W+2) rows starting at offset dh*(W+2)+dw, matmul'd with
#   the (Cin, Fp) tap weights and accumulated in f32.  The 2 junk columns per
#   row and the zero-padded features are sliced off in the wrapper.
# ----------------------------------------------------------------------------
def _conv3x3_kernel(xp_ref, w_ref, b_ref, o_ref, *, h, w):
    wp2 = w + 2
    m = h * wp2
    acc = jnp.dot(xp_ref[0, 0:m, :], w_ref[0],
                  preferred_element_type=jnp.float32)
    for k in range(1, 9):
        dh, dw = divmod(k, 3)
        off = dh * wp2 + dw
        acc = acc + jnp.dot(xp_ref[0, off:off + m, :], w_ref[k],
                            preferred_element_type=jnp.float32)
    acc = acc + b_ref[...]
    o_ref[0] = jnp.maximum(acc, 0.0).astype(o_ref.dtype)


def conv3x3_relu_pallas(x, w, b):
    """3x3 'SAME' conv + ReLU.  x: (N,Cin,H,W), w: (F,Cin,3,3), b: (F,) -> (N,F,H,W)."""
    n, cin, h, wd = x.shape
    f = w.shape[0]
    fp = _round_up(f, 128)          # lane-dense output features (unmasked stores)
    tf = math.gcd(fp, 512)          # feature tile: divides fp, multiple of 128
    wp2 = wd + 2
    m = h * wp2                     # output rows per image (incl. 2 junk cols/row)
    lp = (h + 3) * wp2              # 1 top + 2 bottom pad rows (window-shift halo)

    # One cheap padding/layout pass (replaces the old 9x im2col materialization).
    xn = jnp.pad(x.transpose(0, 2, 3, 1), ((0, 0), (1, 2), (1, 1), (0, 0)))
    xpf = xn.reshape(n, lp, cin)
    wt = jnp.pad(w.transpose(2, 3, 1, 0).reshape(9, cin, f),
                 ((0, 0), (0, 0), (0, fp - f)))
    bt = jnp.pad(b.reshape(1, f), ((0, 0), (0, fp - f)))

    # TODO(synk): tile H with a halo'd row-block index_map if H*W ever grows so
    #   large that a whole (m, tf) output block stops fitting VMEM comfortably.
    out = pl.pallas_call(
        functools.partial(_conv3x3_kernel, h=h, w=wd),
        out_shape=jax.ShapeDtypeStruct((n, m, fp), jnp.float32),
        grid_spec=pltpu.PrefetchScalarGridSpec(
            num_scalar_prefetch=0,
            grid=(n, fp // tf),
            in_specs=[
                pl.BlockSpec((1, lp, cin), lambda ni, fi: (ni, 0, 0)),
                pl.BlockSpec((9, cin, tf), lambda ni, fi: (0, 0, fi)),
                pl.BlockSpec((1, tf), lambda ni, fi: (0, fi)),
            ],
            out_specs=pl.BlockSpec((1, m, tf), lambda ni, fi: (ni, 0, fi)),
        ),
        compiler_params=pltpu.CompilerParams(
            dimension_semantics=("parallel", "parallel"),
            vmem_limit_bytes=32 * 1024 * 1024),
    )(xpf, wt, bt)

    feat = out.reshape(n, h, wp2, fp)[:, :, :wd, :f]   # drop junk cols + padded feats
    return feat.transpose(0, 3, 1, 2)                  # (N, F, H, W)


# ----------------------------------------------------------------------------
# Kernel 2: per-output-dim Gram matrix (+ optional diag noise), D-tiled.
#   phi: (N, F, D) -> K (N, N, D) with K[i,j,d] = (1/F) sum_f phi[i,f,d]*phi[j,f,d]
#   (+ DIAG_NOISE where j == i when add_noise).  Grid = (D tiles, N): the single
#   (N, F, tD) phi block only changes with the (outer) D tile, so it is DMA'd
#   once per tile and reused for every i.  The j-loop keeps the live product at
#   (F, tD) to bound vreg pressure; output tiles are lane-dense (tD mult of 128).
# ----------------------------------------------------------------------------
def _gram_kernel(phi_ref, o_ref, *, add_noise):
    i = pl.program_id(1)
    n = phi_ref.shape[0]
    inv_f = 1.0 / float(phi_ref.shape[1])
    phi_i = phi_ref[i]                                     # (F, tD)

    def body(j, carry):
        pj = phi_ref[j]                                    # (F, tD)
        row = jnp.sum(phi_i * pj, axis=0) * inv_f          # (tD,)
        if add_noise:
            row = row + jnp.where(j == i, DIAG_NOISE, 0.0)
        o_ref[0, pl.ds(j, 1), :] = row[None, :].astype(o_ref.dtype)
        return carry

    jax.lax.fori_loop(0, n, body, 0, unroll=True)


def _pick_gram_tile(d, f):
    if d % 128 != 0:
        return d                      # full-D block (block dim == array dim is legal)
    for t in (512, 256, 128):         # lane-dense tiles; keep (F, tD) live tile small
        if d % t == 0 and f * t * 4 <= 64 * 1024:
            return t
    return 128


def gram_pallas(phi, *, add_noise):
    n, f, d = phi.shape
    td = _pick_gram_tile(d, f)
    return pl.pallas_call(
        functools.partial(_gram_kernel, add_noise=add_noise),
        out_shape=jax.ShapeDtypeStruct((n, n, d), jnp.float32),
        grid_spec=pltpu.PrefetchScalarGridSpec(
            num_scalar_prefetch=0,
            grid=(pl.cdiv(d, td), n),     # D outer => phi block reused across i
            in_specs=[pl.BlockSpec((n, f, td), lambda di, i: (0, 0, di))],
            out_specs=pl.BlockSpec((1, n, td), lambda di, i: (i, 0, di)),
        ),
        compiler_params=pltpu.CompilerParams(
            dimension_semantics=("parallel", "parallel"),
            vmem_limit_bytes=32 * 1024 * 1024),
    )(phi)


# ----------------------------------------------------------------------------
# compute_K (CNN_GP_prior stand-in) and the f_prior_BNN forward
# ----------------------------------------------------------------------------
def compute_K(x, params, num_channels_output):
    n, _, h, w = x.shape
    feat = conv3x3_relu_pallas(x, params["w"], params["b"])      # (N, F, H, W)
    f = feat.shape[1]
    phi = feat.reshape(n, f, h * w)                              # (N, F, P)
    c = num_channels_output

    # Base Gram over phi only (D = P); the per-channel scale for C>1 is folded
    # into the output (K[i,(c,p),j] = scale[c]^2 * Kbase[i,p,j]) instead of
    # materializing a C-times-larger psi tensor.
    kb = gram_pallas(phi, add_noise=(c == 1))                    # (N, N, P)
    kb = kb.transpose(0, 2, 1)                                   # (N, P, N) for consumer
    if c == 1:
        return kb
    scale = 1.0 + 0.1 * jnp.arange(c, dtype=jnp.float32)
    cov = (scale ** 2)[None, :, None, None] * kb[:, None, :, :]  # (N, C, P, N)
    cov = cov.reshape(n, c * h * w, n)
    cov = cov + DIAG_NOISE * jnp.eye(n, dtype=cov.dtype)[:, None, :]
    return cov


def f_prior_bnn_forward(x_t, params, out_size, num_channels_output=1, x_c=None):
    assert x_t.ndim == 4
    x = x_t if x_c is None else jnp.concatenate([x_t, x_c], axis=0)
    n = x.shape[0]
    p = out_size[0] * out_size[1]
    c = num_channels_output
    prior_cov = compute_K(x, params, c)
    if c == 1:
        prior_mean = 0.5 * jnp.ones((n, p * c), jnp.float32)
    else:
        prior_mean = jnp.ones((n, p * c), jnp.float32)
    return prior_mean, prior_cov


if __name__ == "__main__":
    N, Cin, H, W = 2, 4, 16, 16
    F_hidden = 32

    x = jax.random.normal(jax.random.PRNGKey(0), (N, Cin, H, W), jnp.float32)
    wkey, bkey = jax.random.split(jax.random.PRNGKey(42))
    params = {
        "w": 0.1 * jax.random.normal(wkey, (F_hidden, Cin, 3, 3), jnp.float32),
        "b": 0.1 * jax.random.normal(bkey, (F_hidden,), jnp.float32),
    }

    fwd = jax.jit(f_prior_bnn_forward, static_argnums=(2, 3))

    # --- C = 1 path -----------------------------------------------------------
    prior_mean, prior_cov = fwd(x, params, (H, W), 1)
    jax.block_until_ready((prior_mean, prior_cov))

    # pure-JAX reference
    feat_ref = jax.lax.conv_general_dilated(
        x, params["w"], (1, 1), "SAME",
        dimension_numbers=("NCHW", "OIHW", "NCHW"))
    feat_ref = jnp.maximum(feat_ref + params["b"][None, :, None, None], 0.0)
    phi_ref = feat_ref.reshape(N, F_hidden, H * W)
    K_ref = jnp.einsum("ifd,jfd->idj", phi_ref, phi_ref) / F_hidden
    K_ref = K_ref + DIAG_NOISE * jnp.eye(N)[:, None, :]

    assert prior_mean.shape == (N, H * W)
    assert prior_cov.shape == (N, H * W, N)
    assert jnp.allclose(prior_mean, 0.5)
    assert jnp.allclose(prior_cov, K_ref, atol=1e-4, rtol=1e-4)

    # --- C = 2 path (channel scale folded into the Gram output) ----------------
    C2 = 2
    mean2, cov2 = fwd(x, params, (H, W), C2)
    jax.block_until_ready((mean2, cov2))

    scale = 1.0 + 0.1 * jnp.arange(C2, dtype=jnp.float32)
    psi_ref = (phi_ref[:, :, None, :] * scale[None, None, :, None]).reshape(
        N, F_hidden, C2 * H * W)
    K2_ref = jnp.einsum("ifd,jfd->idj", psi_ref, psi_ref) / F_hidden
    K2_ref = K2_ref + DIAG_NOISE * jnp.eye(N)[:, None, :]

    assert mean2.shape == (N, C2 * H * W)
    assert cov2.shape == (N, C2 * H * W, N)
    assert jnp.allclose(mean2, 1.0)
    assert jnp.allclose(cov2, K2_ref, atol=1e-4, rtol=1e-4)

    print("KERNEL_OK")
</pallas_src>

<mosaic_0001>
module attributes {stable_mosaic.version = 11 : i64} {
  func.func @_conv3x3_kernel(%arg0: i32, %arg1: i32, %arg2: memref<1x342x4xf32, #tpu.memory_space<vmem>>, %arg3: memref<9x4x128xf32, #tpu.memory_space<vmem>>, %arg4: memref<1x128xf32, #tpu.memory_space<vmem>>, %arg5: memref<1x288x128xf32, #tpu.memory_space<vmem>>) attributes {dimension_semantics = [#tpu.dimension_semantics<parallel>, #tpu.dimension_semantics<parallel>], iteration_bounds = array<i64: 2, 1>, scalar_prefetch = 0 : i64, scratch_operands = 0 : i64, tpu.core_type = #tpu.core_type<tc>, window_params = [{transform_indices = @transform_0, window_bounds = array<i64: 1, 342, 4>}, {transform_indices = @transform_1, window_bounds = array<i64: 9, 4, 128>}, {transform_indices = @transform_2, window_bounds = array<i64: 1, 128>}, {transform_indices = @transform_3, window_bounds = array<i64: 1, 288, 128>}]} {
    %c0 = arith.constant 0 : index
    %c0_0 = arith.constant 0 : index
    %c0_1 = arith.constant 0 : index
    %0 = vector.load %arg2[%c0, %c0_0, %c0_1] : memref<1x342x4xf32, #tpu.memory_space<vmem>>, vector<1x288x4xf32>
    %1 = vector.shape_cast %0 : vector<1x288x4xf32> to vector<288x4xf32>
    %c0_2 = arith.constant 0 : index
    %c0_3 = arith.constant 0 : index
    %c0_4 = arith.constant 0 : index
    %2 = vector.load %arg3[%c0_2, %c0_3, %c0_4] : memref<9x4x128xf32, #tpu.memory_space<vmem>>, vector<1x4x128xf32>
    %3 = vector.shape_cast %2 : vector<1x4x128xf32> to vector<4x128xf32>
    %cst = arith.constant dense<0.000000e+00> : vector<288x128xf32>
    %4 = tpu.matmul %1, %3, %cst {dimension_numbers = #tpu.dot_dimension_numbers<[1], [0], [0], [1], [0, 0, 1, 1], [], []>} : vector<288x4xf32>, vector<4x128xf32>, vector<288x128xf32> -> vector<288x128xf32>
    %c0_5 = arith.constant 0 : index
    %c1 = arith.constant 1 : index
    %c0_6 = arith.constant 0 : index
    %5 = vector.load %arg2[%c0_5, %c1, %c0_6] : memref<1x342x4xf32, #tpu.memory_space<vmem>>, vector<1x288x4xf32>
    %6 = vector.shape_cast %5 : vector<1x288x4xf32> to vector<288x4xf32>
    %c1_7 = arith.constant 1 : index
    %c0_8 = arith.constant 0 : index
    %c0_9 = arith.constant 0 : index
    %7 = vector.load %arg3[%c1_7, %c0_8, %c0_9] : memref<9x4x128xf32, #tpu.memory_space<vmem>>, vector<1x4x128xf32>
    %8 = vector.shape_cast %7 : vector<1x4x128xf32> to vector<4x128xf32>
    %cst_10 = arith.constant dense<0.000000e+00> : vector<288x128xf32>
    %9 = tpu.matmul %6, %8, %cst_10 {dimension_numbers = #tpu.dot_dimension_numbers<[1], [0], [0], [1], [0, 0, 1, 1], [], []>} : vector<288x4xf32>, vector<4x128xf32>, vector<288x128xf32> -> vector<288x128xf32>
    %10 = arith.addf %4, %9 : vector<288x128xf32>
    %c0_11 = arith.constant 0 : index
    %c2 = arith.constant 2 : index
    %c0_12 = arith.constant 0 : index
    %11 = vector.load %arg2[%c0_11, %c2, %c0_12] : memref<1x342x4xf32, #tpu.memory_space<vmem>>, vector<1x288x4xf32>
    %12 = vector.shape_cast %11 : vector<1x288x4xf32> to vector<288x4xf32>
    %c2_13 = arith.constant 2 : index
    %c0_14 = arith.constant 0 : index
    %c0_15 = arith.constant 0 : index
    %13 = vector.load %arg3[%c2_13, %c0_14, %c0_15] : memref<9x4x128xf32, #tpu.memory_space<vmem>>, vector<1x4x128xf32>
    %14 = vector.shape_cast %13 : vector<1x4x128xf32> to vector<4x128xf32>
    %cst_16 = arith.constant dense<0.000000e+00> : vector<288x128xf32>
    %15 = tpu.matmul %12, %14, %cst_16 {dimension_numbers = #tpu.dot_dimension_numbers<[1], [0], [0], [1], [0, 0, 1, 1], [], []>} : vector<288x4xf32>, vector<4x128xf32>, vector<288x128xf32> -> vector<288x128xf32>
    %16 = arith.addf %10, %15 : vector<288x128xf32>
    %c0_17 = arith.constant 0 : index
    %c18 = arith.constant 18 : index
    %c0_18 = arith.constant 0 : index
    %17 = vector.load %arg2[%c0_17, %c18, %c0_18] : memref<1x342x4xf32, #tpu.memory_space<vmem>>, vector<1x288x4xf32>
    %18 = vector.shape_cast %17 : vector<1x288x4xf32> to vector<288x4xf32>
    %c3 = arith.constant 3 : index
    %c0_19 = arith.constant 0 : index
    %c0_20 = arith.constant 0 : index
    %19 = vector.load %arg3[%c3, %c0_19, %c0_20] : memref<9x4x128xf32, #tpu.memory_space<vmem>>, vector<1x4x128xf32>
    %20 = vector.shape_cast %19 : vector<1x4x128xf32> to vector<4x128xf32>
    %cst_21 = arith.constant dense<0.000000e+00> : vector<288x128xf32>
    %21 = tpu.matmul %18, %20, %cst_21 {dimension_numbers = #tpu.dot_dimension_numbers<[1], [0], [0], [1], [0, 0, 1, 1], [], []>} : vector<288x4xf32>, vector<4x128xf32>, vector<288x128xf32> -> vector<288x128xf32>
    %22 = arith.addf %16, %21 : vector<288x128xf32>
    %c0_22 = arith.constant 0 : index
    %c19 = arith.constant 19 : index
    %c0_23 = arith.constant 0 : index
    %23 = vector.load %arg2[%c0_22, %c19, %c0_23] : memref<1x342x4xf32, #tpu.memory_space<vmem>>, vector<1x288x4xf32>
    %24 = vector.shape_cast %23 : vector<1x288x4xf32> to vector<288x4xf32>
    %c4 = arith.constant 4 : index
    %c0_24 = arith.constant 0 : index
    %c0_25 = arith.constant 0 : index
    %25 = vector.load %arg3[%c4, %c0_24, %c0_25] : memref<9x4x128xf32, #tpu.memory_space<vmem>>, vector<1x4x128xf32>
    %26 = vector.shape_cast %25 : vector<1x4x128xf32> to vector<4x128xf32>
    %cst_26 = arith.constant dense<0.000000e+00> : vector<288x128xf32>
    %27 = tpu.matmul %24, %26, %cst_26 {dimension_numbers = #tpu.dot_dimension_numbers<[1], [0], [0], [1], [0, 0, 1, 1], [], []>} : vector<288x4xf32>, vector<4x128xf32>, vector<288x128xf32> -> vector<288x128xf32>
    %28 = arith.addf %22, %27 : vector<288x128xf32>
    %c0_27 = arith.constant 0 : index
    %c20 = arith.constant 20 : index
    %c0_28 = arith.constant 0 : index
    %29 = vector.load %arg2[%c0_27, %c20, %c0_28] : memref<1x342x4xf32, #tpu.memory_space<vmem>>, vector<1x288x4xf32>
    %30 = vector.shape_cast %29 : vector<1x288x4xf32> to vector<288x4xf32>
    %c5 = arith.constant 5 : index
    %c0_29 = arith.constant 0 : index
    %c0_30 = arith.constant 0 : index
    %31 = vector.load %arg3[%c5, %c0_29, %c0_30] : memref<9x4x128xf32, #tpu.memory_space<vmem>>, vector<1x4x128xf32>
    %32 = vector.shape_cast %31 : vector<1x4x128xf32> to vector<4x128xf32>
    %cst_31 = arith.constant dense<0.000000e+00> : vector<288x128xf32>
    %33 = tpu.matmul %30, %32, %cst_31 {dimension_numbers = #tpu.dot_dimension_numbers<[1], [0], [0], [1], [0, 0, 1, 1], [], []>} : vector<288x4xf32>, vector<4x128xf32>, vector<288x128xf32> -> vector<288x128xf32>
    %34 = arith.addf %28, %33 : vector<288x128xf32>
    %c0_32 = arith.constant 0 : index
    %c36 = arith.constant 36 : index
    %c0_33 = arith.constant 0 : index
    %35 = vector.load %arg2[%c0_32, %c36, %c0_33] : memref<1x342x4xf32, #tpu.memory_space<vmem>>, vector<1x288x4xf32>
    %36 = vector.shape_cast %35 : vector<1x288x4xf32> to vector<288x4xf32>
    %c6 = arith.constant 6 : index
    %c0_34 = arith.constant 0 : index
    %c0_35 = arith.constant 0 : index
    %37 = vector.load %arg3[%c6, %c0_34, %c0_35] : memref<9x4x128xf32, #tpu.memory_space<vmem>>, vector<1x4x128xf32>
    %38 = vector.shape_cast %37 : vector<1x4x128xf32> to vector<4x128xf32>
    %cst_36 = arith.constant dense<0.000000e+00> : vector<288x128xf32>
    %39 = tpu.matmul %36, %38, %cst_36 {dimension_numbers = #tpu.dot_dimension_numbers<[1], [0], [0], [1], [0, 0, 1, 1], [], []>} : vector<288x4xf32>, vector<4x128xf32>, vector<288x128xf32> -> vector<288x128xf32>
    %40 = arith.addf %34, %39 : vector<288x128xf32>
    %c0_37 = arith.constant 0 : index
    %c37 = arith.constant 37 : index
    %c0_38 = arith.constant 0 : index
    %41 = vector.load %arg2[%c0_37, %c37, %c0_38] : memref<1x342x4xf32, #tpu.memory_space<vmem>>, vector<1x288x4xf32>
    %42 = vector.shape_cast %41 : vector<1x288x4xf32> to vector<288x4xf32>
    %c7 = arith.constant 7 : index
    %c0_39 = arith.constant 0 : index
    %c0_40 = arith.constant 0 : index
    %43 = vector.load %arg3[%c7, %c0_39, %c0_40] : memref<9x4x128xf32, #tpu.memory_space<vmem>>, vector<1x4x128xf32>
    %44 = vector.shape_cast %43 : vector<1x4x128xf32> to vector<4x128xf32>
    %cst_41 = arith.constant dense<0.000000e+00> : vector<288x128xf32>
    %45 = tpu.matmul %42, %44, %cst_41 {dimension_numbers = #tpu.dot_dimension_numbers<[1], [0], [0], [1], [0, 0, 1, 1], [], []>} : vector<288x4xf32>, vector<4x128xf32>, vector<288x128xf32> -> vector<288x128xf32>
    %46 = arith.addf %40, %45 : vector<288x128xf32>
    %c0_42 = arith.constant 0 : index
    %c38 = arith.constant 38 : index
    %c0_43 = arith.constant 0 : index
    %47 = vector.load %arg2[%c0_42, %c38, %c0_43] : memref<1x342x4xf32, #tpu.memory_space<vmem>>, vector<1x288x4xf32>
    %48 = vector.shape_cast %47 : vector<1x288x4xf32> to vector<288x4xf32>
    %c8 = arith.constant 8 : index
    %c0_44 = arith.constant 0 : index
    %c0_45 = arith.constant 0 : index
    %49 = vector.load %arg3[%c8, %c0_44, %c0_45] : memref<9x4x128xf32, #tpu.memory_space<vmem>>, vector<1x4x128xf32>
    %50 = vector.shape_cast %49 : vector<1x4x128xf32> to vector<4x128xf32>
    %cst_46 = arith.constant dense<0.000000e+00> : vector<288x128xf32>
    %51 = tpu.matmul %48, %50, %cst_46 {dimension_numbers = #tpu.dot_dimension_numbers<[1], [0], [0], [1], [0, 0, 1, 1], [], []>} : vector<288x4xf32>, vector<4x128xf32>, vector<288x128xf32> -> vector<288x128xf32>
    %52 = arith.addf %46, %51 : vector<288x128xf32>
    %c0_47 = arith.constant 0 : index
    %c0_48 = arith.constant 0 : index
    %53 = vector.load %arg4[%c0_47, %c0_48] : memref<1x128xf32, #tpu.memory_space<vmem>>, vector<1x128xf32>
    %54 = vector.broadcast %53 : vector<1x128xf32> to vector<288x128xf32>
    %55 = arith.addf %52, %54 : vector<288x128xf32>
    %cst_49 = arith.constant 0.000000e+00 : f32
    %56 = vector.broadcast %cst_49 : f32 to vector<288x128xf32>
    %57 = arith.maximumf %55, %56 : vector<288x128xf32>
    %c0_50 = arith.constant 0 : index
    %c0_51 = arith.constant 0 : index
    %c0_52 = arith.constant 0 : index
    %58 = vector.load %arg5[%c0_50, %c0_51, %c0_52] : memref<1x288x128xf32, #tpu.memory_space<vmem>>, vector<1x288x128xf32>
    %59 = vector.shape_cast %58 : vector<1x288x128xf32> to vector<288x128xf32>
    %60 = vector.shape_cast %57 : vector<288x128xf32> to vector<1x288x128xf32>
    tpu.vector_store %arg5[%c0_50, %c0_51, %c0_52], %60 {strides = array<i32>} : memref<1x288x128xf32, #tpu.memory_space<vmem>>, vector<1x288x128xf32>,
    return
  }
  func.func @transform_0(%arg0: i32, %arg1: i32) -> (i32, i32, i32) {
    %c0_i32 = arith.constant 0 : i32
    %c0_i32_0 = arith.constant 0 : i32
    %c0_i32_1 = arith.constant 0 : i32
    return %arg0, %c0_i32, %c0_i32_0 : i32, i32, i32
  }
  func.func @transform_1(%arg0: i32, %arg1: i32) -> (i32, i32, i32) {
    %c0_i32 = arith.constant 0 : i32
    %c0_i32_0 = arith.constant 0 : i32
    %c0_i32_1 = arith.constant 0 : i32
    return %c0_i32, %c0_i32_0, %arg1 : i32, i32, i32
  }
  func.func @transform_2(%arg0: i32, %arg1: i32) -> (i32, i32) {
    %c0_i32 = arith.constant 0 : i32
    %c0_i32_0 = arith.constant 0 : i32
    return %c0_i32, %arg1 : i32, i32
  }
  func.func @transform_3(%arg0: i32, %arg1: i32) -> (i32, i32, i32) {
    %c0_i32 = arith.constant 0 : i32
    %c0_i32_0 = arith.constant 0 : i32
    return %arg0, %c0_i32, %arg1 : i32, i32, i32
  }
}

module attributes {stable_mosaic.version = 11 : i64} {
  func.func @_gram_kernel(%arg0: i32, %arg1: i32, %arg2: memref<2x32x256xf32, #tpu.memory_space<vmem>>, %arg3: memref<1x2x256xf32, #tpu.memory_space<vmem>>) attributes {dimension_semantics = [#tpu.dimension_semantics<parallel>, #tpu.dimension_semantics<parallel>], iteration_bounds = array<i64: 1, 2>, scalar_prefetch = 0 : i64, scratch_operands = 0 : i64, tpu.core_type = #tpu.core_type<tc>, window_params = [{transform_indices = @transform_0, window_bounds = array<i64: 2, 32, 256>}, {transform_indices = @transform_1, window_bounds = array<i64: 1, 2, 256>}]} {
    %0 = arith.index_cast %arg1 : i32 to index
    %c0 = arith.constant 0 : index
    %c0_0 = arith.constant 0 : index
    %1 = vector.load %arg2[%0, %c0, %c0_0] : memref<2x32x256xf32, #tpu.memory_space<vmem>>, vector<1x32x256xf32>
    %2 = vector.shape_cast %1 : vector<1x32x256xf32> to vector<32x256xf32>
    %c0_i32 = arith.constant 0 : i32
    %3 = arith.index_cast %c0_i32 : i32 to index
    %c0_1 = arith.constant 0 : index
    %c0_2 = arith.constant 0 : index
    %4 = vector.load %arg2[%3, %c0_1, %c0_2] : memref<2x32x256xf32, #tpu.memory_space<vmem>>, vector<1x32x256xf32>
    %5 = vector.shape_cast %4 : vector<1x32x256xf32> to vector<32x256xf32>
    %6 = arith.mulf %2, %5 : vector<32x256xf32>
    %cst = arith.constant dense<0.000000e+00> : vector<256xf32>
    %7 = vector.multi_reduction <add>, %6, %cst [0] : vector<32x256xf32> to vector<256xf32>
    %cst_3 = arith.constant 3.125000e-02 : f32
    %8 = vector.broadcast %cst_3 : f32 to vector<256xf32>
    %9 = arith.mulf %7, %8 : vector<256xf32>
    %10 = arith.cmpi eq, %c0_i32, %arg1 : i32
    %cst_4 = arith.constant 1.000000e-01 : f32
    %cst_5 = arith.constant 0.000000e+00 : f32
    %11 = arith.select %10, %cst_4, %cst_5 : f32
    %12 = vector.broadcast %11 : f32 to vector<256xf32>
    %13 = arith.addf %9, %12 : vector<256xf32>
    %14 = vector.shape_cast %13 : vector<256xf32> to vector<1x256xf32>
    %c0_6 = arith.constant 0 : index
    %15 = arith.index_cast %c0_i32 : i32 to index
    %c0_7 = arith.constant 0 : index
    %16 = vector.load %arg3[%c0_6, %15, %c0_7] : memref<1x2x256xf32, #tpu.memory_space<vmem>>, vector<1x1x256xf32>
    %17 = vector.shape_cast %16 : vector<1x1x256xf32> to vector<1x256xf32>
    %18 = vector.shape_cast %14 : vector<1x256xf32> to vector<1x1x256xf32>
    tpu.vector_store %arg3[%c0_6, %15, %c0_7], %18 {strides = array<i32>} : memref<1x2x256xf32, #tpu.memory_space<vmem>>, vector<1x1x256xf32>,
    %c1_i32 = arith.constant 1 : i32
    %19 = arith.index_cast %c1_i32 : i32 to index
    %c0_8 = arith.constant 0 : index
    %c0_9 = arith.constant 0 : index
    %20 = vector.load %arg2[%19, %c0_8, %c0_9] : memref<2x32x256xf32, #tpu.memory_space<vmem>>, vector<1x32x256xf32>
    %21 = vector.shape_cast %20 : vector<1x32x256xf32> to vector<32x256xf32>
    %22 = arith.mulf %2, %21 : vector<32x256xf32>
    %cst_10 = arith.constant dense<0.000000e+00> : vector<256xf32>
    %23 = vector.multi_reduction <add>, %22, %cst_10 [0] : vector<32x256xf32> to vector<256xf32>
    %cst_11 = arith.constant 3.125000e-02 : f32
    %24 = vector.broadcast %cst_11 : f32 to vector<256xf32>
    %25 = arith.mulf %23, %24 : vector<256xf32>
    %26 = arith.cmpi eq, %c1_i32, %arg1 : i32
    %cst_12 = arith.constant 1.000000e-01 : f32
    %cst_13 = arith.constant 0.000000e+00 : f32
    %27 = arith.select %26, %cst_12, %cst_13 : f32
    %28 = vector.broadcast %27 : f32 to vector<256xf32>
    %29 = arith.addf %25, %28 : vector<256xf32>
    %30 = vector.shape_cast %29 : vector<256xf32> to vector<1x256xf32>
    %c0_14 = arith.constant 0 : index
    %31 = arith.index_cast %c1_i32 : i32 to index
    %c0_15 = arith.constant 0 : index
    %32 = vector.load %arg3[%c0_14, %31, %c0_15] : memref<1x2x256xf32, #tpu.memory_space<vmem>>, vector<1x1x256xf32>
    %33 = vector.shape_cast %32 : vector<1x1x256xf32> to vector<1x256xf32>
    %34 = vector.shape_cast %30 : vector<1x256xf32> to vector<1x1x256xf32>
    tpu.vector_store %arg3[%c0_14, %31, %c0_15], %34 {strides = array<i32>} : memref<1x2x256xf32, #tpu.memory_space<vmem>>, vector<1x1x256xf32>,
    %c2_i32 = arith.constant 2 : i32
    return
  }
  func.func @transform_0(%arg0: i32, %arg1: i32) -> (i32, i32, i32) {
    %c0_i32 = arith.constant 0 : i32
    %c0_i32_0 = arith.constant 0 : i32
    %c0_i32_1 = arith.constant 0 : i32
    return %c0_i32, %c0_i32_0, %arg0 : i32, i32, i32
  }
  func.func @transform_1(%arg0: i32, %arg1: i32) -> (i32, i32, i32) {
    %c0_i32 = arith.constant 0 : i32
    %c0_i32_0 = arith.constant 0 : i32
    return %arg1, %c0_i32, %arg0 : i32, i32, i32
  }
}

</mosaic_0001>

<bundles_post_ra>
// kernel: mul.1
= control target key start
LH: loop header
LB: loop body
LE: loop exit
PB: predicated region body
PF: predicated region fallthrough
CT: control target
= control target key end

     0   :  { %s57_s0 = inlined_call_operand.<no memory space> [shape: f32[], index: 0, kind: input, shape index: {}]   ;;  %s58_s1 = inlined_call_operand.hbm [shape: f32[2,256], index: 1, kind: output, shape index: {}]  }
   0x1   :  { %v2_v0 = vstv %s57_s0 }
   0x2   :  { %3 = vsyncpa [#allocation1], 0  ;;  %4 = vst [vmem:[#allocation0] sm:$0x3] %v2_v0  ;;  %s40_s0 = smov [#allocation0]  }
   0x3   :  { %6 = vst [vmem:[#allocation0 + $0x2] sm:$0x3] %v2_v0  ;;  %s11_s8 = sshll.u32 %s40_s0, 4  ;;  %s12_s8 = int_to_ptr.vmem [resolvable:$true] %s11_s8 }
   0x4   :  { %s18_s9 = scalar_lea.vmem %s12_s8, 64  ;;  %p23_p1 = scmp.lt.s32.totalorder %s12_s8, %s12_s8 }
   0x5   :  { %p19_p0 = scmp.ne.s32.totalorder %s12_s8, %s18_s9  ;;  %p24_p2 = scmp.lt.s32.totalorder %s18_s9, %s18_s9 }
   0x7   :  { %p25_p3 = por %p24_p2, %p23_p1 }
   0x9   :  { %p26_p4 = pnand %p25_p3, %p19_p0 }
   0xb   :  { %29 = shalt.err (!%p26_p4)
}
   0xc   :  { %14 = dma.vmem_to_hbm [thread:$0]  %s12_s8, 64, %s58_s1, [#allocation1]  }
   0xd   :  { %38 = dma.done.wait [#allocation1], 64  }
   0xe   :  { %39 = vsyncadd [#allocation1], 4294967232 }
   0xf   :  { %16 = vsyncpa [#allocation1], 1 }

// kernel: f_prior_bnn_forward.3
= control target key start
LH: loop header
LB: loop body
LE: loop exit
PB: predicated region body
PF: predicated region fallthrough
CT: control target
= control target key end

     0   :  { %6 = vsyncpa [#allocation3], 0  ;;  %s688_s0 = inlined_call_operand.vmem [shape: f32[2,32,256], index: 0, kind: input, shape index: {}]   ;;  %s689_s1 = inlined_call_operand.hbm [shape: f32[2,2,256], index: 1, kind: output, shape index: {}]  }
   0x1   :  { %8 = vsyncpa [#allocation3 + $0x1], 0  ;;  %s531_s6 = smov 0   ;;  %s533_s7 = smov 0  }
   0x2   :  { %s535_s8 = smov 0   ;;  %s537_s9 = smov 0  }
   0x3   :  { %s539_s10 = smov 0   ;;  %s541_s11 = smov 0  }
   0x4 LB: > { %s361_s12 = sadd.s32 4294967295, %s517_s11   ;;  %s362_s13 = sadd.s32 4294967294, %s517_s11   ;;  %s517_s11 = sphi %s541_s11, %s14_s11   ;;  %s513_s10 = sphi %s539_s10, %s696_s10   ;;  %s509_s9 = sphi %s537_s9, %s695_s9   ;;  %s505_s8 = sphi %s535_s8, %s694_s8   ;;  %s501_s7 = sphi %s533_s7, %s693_s7   ;;  %s497_s6 = sphi %s531_s6, %s692_s6  }
   0x5   : > { %s23_s14 = sadd.s32 1, %s513_s10  ;;  %s61_s15 = sadd.s32 1, %s505_s8 }
   0x6   : > { %p24_p0 = scmp.ge.s32.totalorder %s23_s14, 2  ;;  %p71_p1 = scmp.ne.s32.totalorder %s505_s8, %s501_s7 }
   0x7   : > { %p72_p2 = scmp.eq.s32.totalorder %s361_s12, 1  ;;  %p77_p3 = scmp.ne.s32.totalorder %s501_s7, %s497_s6 }
   0x8   : > { %s698_s14 = smov (%p24_p0, %s23_s14), 0  ;;  %p78_p5 = scmp.eq.s32.totalorder %s362_s13, 1 }
   0x9   : > { %p571_p4 = por %p72_p2, %p71_p1  ;;  %s56_s17 = ssub.s32 %s513_s10, %s698_s14 }
   0xa   : > { %p365_p6 = scmp.ge.s32.totalorder %s517_s11, 1  ;;  %p59_p7 = scmp.eq.s32.totalorder %s56_s17, 0 }
   0xb   : > { %p578_p8 = por %p78_p5, %p77_p3  ;;  %p105_p9 = scmp.lt.s32.totalorder %s517_s11, 3 }
   0xc   : > { %s584_s19 = scalar_select %p59_p7, %s505_s8, %s61_s15  }
   0xd   : > { %p106_p10 = pnand %p365_p6, %p105_p9 }
   0xe   : > { %s383_s20 = sshll.u32 (!%p106_p10), %s509_s9, 6  ;;  %p179_p11 = scmp.eq.s32.totalorder (!%p106_p10), %s509_s9, 0 }
   0xf   : > { %109 = sbr.rel (%p106_p10) target bundleno = 70 (0x46), region = 24  ;;  %s134_s29 = scalar_lea.vmem (!%p106_p10), %s688_s0, %s383_s20 }
  0x10   : > { %p244_p12 = scmp.eq.s32.totalorder (!%p106_p10), %s509_s9, 1  ;;  %s122_s22 = sand.u32 (!%p106_p10), 1, %s501_s7  }
  0x11   : > { %s366_s23 = sshll.u32 (!%p106_p10), %s122_s22, 2  ;;  %s284_s28 = scalar_lea.hbm (!%p106_p10), %s689_s1, %s383_s20 }
  0x12   : > { %s124_s24 = scalar_lea.vmem (!%p106_p10), [#allocation2], %s366_s23  ;;  %s520_s2 = smov (!%p106_p10), [#allocation2]  }
  0x13   : > { %s286_s25 = sshll.u32 (!%p106_p10), %s124_s24, 4  ;;  %s445_s3 = sshll.u32 (!%p106_p10), %s520_s2, 4  ;;  %s643_s25 = int_to_ptr.vmem [resolvable:$true] %s286_s25  ;;  %s446_s3 = int_to_ptr.vmem [resolvable:$false] %s445_s3 }
  0x14   : > { %v143_v0 = vld [vmem:[%s688_s0] sm:$0xff]  ;;  %v144_v1 = vld [vmem:[%s688_s0 + $0x8] sm:$0xff]  ;;  %v145_v2 = vld [vmem:[%s688_s0 + $0x10] sm:$0xff]  ;;  %s180_s17 = scalar_select %p179_p11, 0.1, 0.0  ;;  %v190_v61 = vlaneseq }
  0x15   : > { %v146_v3 = vld [vmem:[%s688_s0 + $0x18] sm:$0xff]  ;;  %v147_v4 = vld [vmem:[%s688_s0 + $0x20] sm:$0xff]  ;;  %v148_v5 = vld [vmem:[%s688_s0 + $0x28] sm:$0xff]  ;;  %s245_s21 = scalar_select %p244_p12, 0.1, 0.0 }
  0x16   : > { %v135_v6 = vld [vmem:[%s134_s29] sm:$0xff]  ;;  %v136_v7 = vld [vmem:[%s134_s29 + $0x8] sm:$0xff]  ;;  %v137_v8 = vld [vmem:[%s134_s29 + $0x10] sm:$0xff]  ;;  %vm204_vm0 = vcmp.lt.s32.totalorder %v190_v61, 256  ;;  %s441_s30 = scalar_lea.vmem %s643_s25, 64  ;;  %s447_s4 = scalar_lea.vmem %s446_s3, 128 }
  0x17   : > { %v138_v9 = vld [vmem:[%s134_s29 + $0x18] sm:$0xff]  ;;  %v139_v10 = vld [vmem:[%s134_s29 + $0x20] sm:$0xff]  ;;  %v140_v11 = vld [vmem:[%s134_s29 + $0x28] sm:$0xff]  ;;  %v151_v12 = vmul.f32 %v143_v0, %v135_v6  ;;  %v152_v13 = vmul.f32 %v144_v1, %v136_v7  ;;  %v153_v14 = vmul.f32 %v145_v2, %v137_v8  ;;  %v519_v0 = vmov 1966171168   ;;  %p442_p13 = scmp.ne.s32.totalorder %s643_s25, %s441_s30  ;;  %p448_p2 = scmp.lt.s32.totalorder %s643_s25, %s446_s3 }
  0x18   : > { %v141_v15 = vld [vmem:[%s134_s29 + $0x30] sm:$0xff]  ;;  %v142_v16 = vld [vmem:[%s134_s29 + $0x38] sm:$0xff]  ;;  %v154_v18 = vmul.f32 %v146_v3, %v138_v9  ;;  %v155_v19 = vmul.f32 %v147_v4, %v139_v10  ;;  %v156_v20 = vmul.f32 %v148_v5, %v140_v11  ;;  %v369_v24 = vld [vmem:[%s688_s0 + $0x40] sm:$0xff]  ;;  %v188_v1 = vunpack.c.l.s4 %v519_v0  ;;  %s270_s29 = scalar_lea.sflag [#allocation3], %s122_s22  ;;  %p449_p3 = scmp.lt.s32.totalorder %s447_s4, %s441_s30 }
  0x19   : > { %v149_v17 = vld [vmem:[%s688_s0 + $0x30] sm:$0xff]  ;;  %v150_v21 = vld [vmem:[%s688_s0 + $0x38] sm:$0xff]  ;;  %v159_v23 = vadd.f32 %v153_v14, %v151_v12  ;;  %v370_v25 = vld [vmem:[%s688_s0 + $0x48] sm:$0xff]  ;;  %v216_v35 = vmul.f32 %v369_v24, %v135_v6  ;;  %p443_p0 = pnand %p442_p13, %p571_p4 }
  0x1a   : > { %v157_v22 = vmul.f32 %v149_v17, %v141_v15  ;;  %v158_v26 = vmul.f32 %v150_v21, %v142_v16  ;;  %v168_v27 = vadd.f32 %v154_v18, %v152_v13  ;;  %v371_v28 = vld [vmem:[%s688_s0 + $0x50] sm:$0xff]  ;;  %v372_v29 = vld [vmem:[%s688_s0 + $0x58] sm:$0xff]  ;;  %v373_v30 = vld [vmem:[%s688_s0 + $0x60] sm:$0xff]  ;;  %v217_v36 = vmul.f32 %v370_v25, %v136_v7  ;;  %p450_p5 = por %p449_p3, %p448_p2 }
  0x1b   : > { %v160_v31 = vadd.f32 %v159_v23, %v155_v19  ;;  %v374_v32 = vld [vmem:[%s688_s0 + $0x68] sm:$0xff]  ;;  %v375_v33 = vld [vmem:[%s688_s0 + $0x70] sm:$0xff]  ;;  %v376_v34 = vld [vmem:[%s688_s0 + $0x78] sm:$0xff]  ;;  %v218_v37 = vmul.f32 %v371_v28, %v137_v8  ;;  %v219_v39 = vmul.f32 %v372_v29, %v138_v9  ;;  %v220_v40 = vmul.f32 %v373_v30, %v139_v10  ;;  %p444_p1 = pneg %p443_p0 }
  0x1c   : > { %v169_v38 = vadd.f32 %v168_v27, %v156_v20  ;;  %v221_v41 = vmul.f32 %v374_v32, %v140_v11  ;;  %v222_v43 = vmul.f32 %v375_v33, %v141_v15  ;;  %v223_v46 = vmul.f32 %v376_v34, %v142_v16 }
  0x1d   : > { %v161_v42 = vadd.f32 %v160_v31, %v157_v22  ;;  %v224_v44 = vadd.f32 %v218_v37, %v216_v35  ;;  %v233_v47 = vadd.f32 %v219_v39, %v217_v36  ;;  %v191_v8 = vshrl.u32 %v190_v61, 7  ;;  %p451_p6 = pnand %p450_p5, %p444_p1 }
  0x1e   : > { %v170_v45 = vadd.f32 %v169_v38, %v158_v26  ;;  %v181_v11 = vstv %s180_s17  ;;  %v189_v12 = vunpack.c.0.s8 %v188_v1  ;;  %v246_v23 = vstv %s245_s21 }
  0x1f   : > { %v162_v48 = vrot.slane %v161_v42, 4  ;;  %v225_v49 = vadd.f32 %v224_v44, %v220_v40  ;;  %v234_v51 = vadd.f32 %v233_v47, %v221_v41 }
  0x20   : > { %v171_v50 = vrot.slane %v170_v45, 4  ;;  %v192_v21 = vsub.s32 %v189_v12, %v191_v8 }
  0x21   : > { %v163_v52 = vadd.f32 %v162_v48, %v161_v42  ;;  %v226_v53 = vadd.f32 %v225_v49, %v222_v43  ;;  %v235_v55 = vadd.f32 %v234_v51, %v223_v46 }
  0x22   : > { %v172_v54 = vadd.f32 %v171_v50, %v170_v45 }
  0x23   : > { %v164_v56 = vrot.slane %v163_v52, 2  ;;  %v227_v57 = vrot.slane %v226_v53, 4  ;;  %v236_v59 = vrot.slane %v235_v55, 4 }
  0x24   : > { %v173_v58 = vrot.slane %v172_v54, 2 }
  0x25   : > { %v165_v60 = vadd.f32 %v164_v56, %v163_v52  ;;  %v228_v62 = vadd.f32 %v227_v57, %v226_v53  ;;  %v237_v2 = vadd.f32 %v236_v59, %v235_v55 }
  0x26   : > { %v174_v63 = vadd.f32 %v173_v58, %v172_v54 }
  0x27   : > { %v166_v3 = vrot.slane %v165_v60, 1  ;;  %v229_v4 = vrot.slane %v228_v62, 2  ;;  %v238_v6 = vrot.slane %v237_v2, 2 }
  0x28   : > { %v175_v5 = vrot.slane %v174_v63, 1 }
  0x29   : > { %v167_v7 = vadd.f32 %v166_v3, %v165_v60  ;;  %v230_v9 = vadd.f32 %v229_v4, %v228_v62  ;;  %v239_v13 = vadd.f32 %v238_v6, %v237_v2 }
  0x2a   : > { %v176_v10 = vadd.f32 %v175_v5, %v174_v63 }
  0x2b   : > { %v177_v14 = vmul.f32 0.03125, %v167_v7  ;;  %v231_v15 = vrot.slane %v230_v9, 1  ;;  %v240_v17 = vrot.slane %v239_v13, 1 }
  0x2c   : > { %v178_v16 = vmul.f32 0.03125, %v176_v10 }
  0x2d   : > { %v182_v18 = vadd.f32 %v181_v11, %v177_v14  ;;  %v232_v19 = vadd.f32 %v231_v15, %v230_v9  ;;  %v241_v22 = vadd.f32 %v240_v17, %v239_v13 }
  0x2e   : > { %v183_v20 = vadd.f32 %v181_v11, %v178_v16 }
  0x2f   : > { %v242_v24 = vmul.f32 0.03125, %v232_v19  ;;  %v243_v26 = vmul.f32 0.03125, %v241_v22 }
  0x30   : > { %v186_v25 = vcombine.low %v182_v18, %v183_v20 }
  0x31   : > { %v247_v27 = vadd.f32 %v246_v23, %v242_v24  ;;  %v248_v29 = vadd.f32 %v246_v23, %v243_v26 }
  0x32   : > { %v193_v28 = vrot.slane %v186_v25, %v192_v21 }
  0x33   : > { %v251_v31 = vcombine.low %v247_v27, %v248_v29 }
  0x34   : > { %v200_v30 = vrot.slane %v193_v28, %v192_v21 }
  0x35   : > { %v258_v32 = vrot.slane %v251_v31, %v192_v21 }
  0x36   : > { %206 = vst.msk [vmem:[%s124_s24] ss:$2 sm:$0x3] %vm204_vm0, %v200_v30 }
  0x37   : > { %v265_v33 = vrot.slane %v258_v32, %v192_v21 }
  0x39   : > { %377 = vst.msk [vmem:[%s124_s24 + $0x1] ss:$2 sm:$0x3] %vm204_vm0, %v265_v33 }
  0x3a   : > { %454 = shalt.err (!%p451_p6)
}
  0x3b   : > { %s455_s9 = scalar_lea.hbm %s284_s28, 64  ;;  %s459_s12 = scalar_lea.hbm %s689_s1, 128 }
  0x3c   : > { %p456_p7 = scmp.ne.s32.totalorder %s284_s28, %s455_s9  ;;  %p460_p11 = scmp.lt.s32.totalorder %s284_s28, %s689_s1 }
  0x3d   : > { %p461_p12 = scmp.lt.s32.totalorder %s459_s12, %s455_s9 }
  0x3e   : > { %p457_p9 = pnand %p456_p7, %p571_p4 }
  0x3f   : > { %p462_p13 = por %p461_p12, %p460_p11 }
  0x40   : > { %p458_p10 = pneg %p457_p9 }
  0x42   : > { %p463_p0 = pnand %p462_p13, %p458_p10 }
  0x44   : > { %466 = shalt.err (!%p463_p0)
}
  0x45   : > { %385 = dma.vmem_to_hbm [thread:$0]  (%p571_p4), %s643_s25, 64, %s284_s28, %s270_s29  }
  0x46 PF: > { %p391_p1 = scmp.ge.s32.totalorder %s517_s11, 2  ;;  %s298_s17 = sand.u32 1, %s497_s6  }
  0x47   : > { %s299_s21 = scalar_lea.sflag [#allocation3], %s298_s17 }
  0x48   : > { %p388_p2 = pnand %p391_p1, %p578_p8 }
  0x4a   : > { %p389_p3 = pneg %p388_p2 }
  0x4c   : > { %492 = dma.done.wait (%p389_p3), %s299_s21, 64  }
  0x4d   : > { %494 = vsyncadd (%p389_p3), %s299_s21, 4294967232  ;;  %s14_s11 = sadd.s32 1, %s517_s11   ;;  %s692_s6 = smov %s501_s7 }
  0x4e   : > { %p11_p5 = scmp.ge.s32.totalorder %s14_s11, 4   ;;  %s693_s7 = smov %s505_s8 }
  0x4f   : > { %s694_s8 = smov %s584_s19  ;;  %s695_s9 = smov %s513_s10 }
  0x50   : > { %s696_s10 = smov %s698_s14  ;;  %13 = sbr.rel (!%p11_p5) target bundleno = 4 (0x4), region = 62 }
  0x55   :  { %304 = vsyncpa [#allocation3], 1 }
  0x56   :  { %306 = vsyncpa [#allocation3 + $0x1], 1 }

// kernel: f_prior_bnn_forward.2
= control target key start
LH: loop header
LB: loop body
LE: loop exit
PB: predicated region body
PF: predicated region fallthrough
CT: control target
= control target key end

     0   :  { %s5503_s12 = smov 0   ;;  %s5505_s13 = smov 0   ;;  %s6840_s0 = inlined_call_operand.vmem [shape: f32[2,342,4], index: 0, kind: input, shape index: {}]   ;;  %s6841_s1 = inlined_call_operand.vmem [shape: f32[9,4,128], index: 1, kind: input, shape index: {}]   ;;  %s6842_s2 = inlined_call_operand.vmem [shape: f32[1,128], index: 2, kind: input, shape index: {}]   ;;  %s6843_s3 = inlined_call_operand.vmem [shape: f32[2,288,128], index: 3, kind: output, shape index: {}]  }
   0x1   :  { %s5507_s14 = smov 0  }
   0x2 LB: > { %s25_s15 = sadd.s32 1, %s5477_s13  ;;  %p4247_p0 = scmp.ge.s32.totalorder %s5481_s14, 1  ;;  %s5481_s14 = sphi %s5507_s14, %s13_s14   ;;  %s5477_s13 = sphi %s5505_s13, %s6845_s13   ;;  %s5473_s12 = sphi %s5503_s12, %s6844_s12  }
   0x3   : > { %p27_p1 = scmp.ge.s32.totalorder %s25_s15, 2  ;;  %p168_p2 = scmp.lt.s32.totalorder %s5481_s14, 3 }
   0x5   : > { %s6847_s15 = smov (%p27_p1, %s25_s15), 0  ;;  %p169_p3 = pnand %p4247_p0, %p168_p2 }
   0x6   : > { %p202_p4 = scmp.lt.s32.totalorder (!%p169_p3), %s5473_s12, 1 }
   0x7   : > { %172 = sbr.rel (%p169_p3) target bundleno = 542 (0x21e), region = 32 }
   0xc   : > { %v4250_v0 = vld [vmem:[%s6841_s1 + $0x4] sm:$0xf]  ;;  %vm406_vm0 = vcmask 1043456   ;;  %v258_v1 = vld [vmem:[%s6841_s1] sm:$0xf]  ;;  %s6849_s12 = smov (!%p202_p4, %s5473_s12), 1 }
   0xd   : > { %5431 = vmatprep.subr.msk.mxu1 %vm406_vm0, %v4250_v0  ;;  %4927 = vmatprep.subr.msk.mxu0 %vm406_vm0, %v4250_v0  ;;  %v4325_v2 = vld [vmem:[%s6841_s1 + $0x8] sm:$0xf]  ;;  %s5433_s22 = smul.u32 344, %s6849_s12  ;;  %vm297_vm1 = vcmask 31744   ;;  %v5557_v9 = vld [vmem:[%s6841_s1 + $0xc] sm:$0xf] }
   0xe   : > { %5432 = vmatpush3.msk.msra.mxu1 %vm406_vm0, %v4250_v0  ;;  %4928 = vmatpush3.msk.msra.mxu0 %vm406_vm0, %v4250_v0  ;;  %v5562_v10 = vld [vmem:[%s6841_s1 + $0x10] sm:$0xf]  ;;  %v5647_v47 = vld [vmem:[%s6841_s1 + $0x14] sm:$0xf]  ;;  %v5652_v48 = vld [vmem:[%s6841_s1 + $0x18] sm:$0xf] }
   0xf   : > { %4983 = vmatprep.subr.msk.mxu1 %vm406_vm0, %v258_v1  ;;  %5039 = vmatprep.subr.msk.mxu0 %vm406_vm0, %v4325_v2  ;;  %s5542_s25 = scalar_lea.vmem %s6840_s0, %s5433_s22  ;;  %s5434_s11 = smul.u32 288, %s6849_s12 }
  0x10   : > { %v259_v3 = vld [vmem:[%s5542_s25 + $0x1] sm:$0xff]  ;;  %v277_v4 = vld [vmem:[%s5542_s25 + $0x91] sm:$0xff]  ;;  %v260_v5 = vld [vmem:[%s5542_s25 + $0x9] sm:$0xff] }
  0x11   : > { %4929 = vmatprep.mubr.msk.f32.mxu0 %vm297_vm1, %v259_v3  ;;  %4956 = vmatprep.mubr.msk.f32.mxu1 %vm297_vm1, %v277_v4  ;;  %v278_v6 = vld [vmem:[%s5542_s25 + $0x99] sm:$0xff]  ;;  %v261_v7 = vld [vmem:[%s5542_s25 + $0x11] sm:$0xff]  ;;  %v279_v8 = vld [vmem:[%s5542_s25 + $0xa1] sm:$0xff]  ;;  %s6725_s12 = scalar_lea.vmem %s6843_s3, %s5434_s11 }
  0x12   : > { %4930 = vmatmul.mubr.msk.f32.vlgmr.msra.gmra.mxu0 %vm297_vm1, %v260_v5  ;;  %4957 = vmatmul.mubr.msk.f32.vlgmr.msra.gmra.mxu1 %vm297_vm1, %v278_v6  ;;  %v262_v11 = vld [vmem:[%s5542_s25 + $0x19] sm:$0xff]  ;;  %v280_v12 = vld [vmem:[%s5542_s25 + $0xa9] sm:$0xff]  ;;  %v263_v13 = vld [vmem:[%s5542_s25 + $0x21] sm:$0xff] }
  0x13   : > { %4984 = vmatpush3.msk.msra.mxu1 %vm406_vm0, %v258_v1  ;;  %5040 = vmatpush3.msk.msra.mxu0 %vm406_vm0, %v4325_v2  ;;  %v281_v14 = vld [vmem:[%s5542_s25 + $0xb1] sm:$0xff]  ;;  %v264_v15 = vld [vmem:[%s5542_s25 + $0x29] sm:$0xff]  ;;  %v282_v16 = vld [vmem:[%s5542_s25 + $0xb9] sm:$0xff] }
  0x14   : > { %4932 = vmatprep.mubr.msk.f32.mxu0 %vm297_vm1, %v261_v7  ;;  %4959 = vmatprep.mubr.msk.f32.mxu1 %vm297_vm1, %v279_v8  ;;  %v265_v17 = vld [vmem:[%s5542_s25 + $0x31] sm:$0xff]  ;;  %v283_v18 = vld [vmem:[%s5542_s25 + $0xc1] sm:$0xff]  ;;  %v266_v19 = vld [vmem:[%s5542_s25 + $0x39] sm:$0xff] }
  0x15   : > { %5095 = vmatprep.subr.msk.mxu1 %vm406_vm0, %v5557_v9  ;;  %5151 = vmatprep.subr.msk.mxu0 %vm406_vm0, %v5562_v10  ;;  %v284_v20 = vld [vmem:[%s5542_s25 + $0xc9] sm:$0xff]  ;;  %v267_v21 = vld [vmem:[%s5542_s25 + $0x41] sm:$0xff]  ;;  %v285_v22 = vld [vmem:[%s5542_s25 + $0xd1] sm:$0xff] }
  0x16   : > { %4933 = vmatmul.mubr.msk.f32.gmra.mxu0 %vm297_vm1, %v262_v11  ;;  %4960 = vmatmul.mubr.msk.f32.gmra.mxu1 %vm297_vm1, %v280_v12  ;;  %v268_v23 = vld [vmem:[%s5542_s25 + $0x49] sm:$0xff]  ;;  %v286_v24 = vld [vmem:[%s5542_s25 + $0xd9] sm:$0xff]  ;;  %v269_v25 = vld [vmem:[%s5542_s25 + $0x51] sm:$0xff] }
  0x17   : > { %4935 = vmatprep.mubr.msk.f32.mxu0 %vm297_vm1, %v263_v13  ;;  %4962 = vmatprep.mubr.msk.f32.mxu1 %vm297_vm1, %v281_v14  ;;  %v287_v26 = vld [vmem:[%s5542_s25 + $0xe1] sm:$0xff]  ;;  %v270_v27 = vld [vmem:[%s5542_s25 + $0x59] sm:$0xff]  ;;  %v288_v28 = vld [vmem:[%s5542_s25 + $0xe9] sm:$0xff] }
  0x18   : > { %v271_v29 = vld [vmem:[%s5542_s25 + $0x61] sm:$0xff]  ;;  %v289_v30 = vld [vmem:[%s5542_s25 + $0xf1] sm:$0xff]  ;;  %v272_v31 = vld [vmem:[%s5542_s25 + $0x69] sm:$0xff] }
  0x19   : > { %v290_v32 = vld [vmem:[%s5542_s25 + $0xf9] sm:$0xff]  ;;  %v273_v33 = vld [vmem:[%s5542_s25 + $0x71] sm:$0xff]  ;;  %v291_v34 = vld [vmem:[%s5542_s25 + $0x101] sm:$0xff] }
  0x1a   : > { %4936 = vmatmul.mubr.msk.f32.gmra.mxu0 %vm297_vm1, %v264_v15  ;;  %4963 = vmatmul.mubr.msk.f32.gmra.mxu1 %vm297_vm1, %v282_v16  ;;  %v274_v35 = vld [vmem:[%s5542_s25 + $0x79] sm:$0xff]  ;;  %v292_v36 = vld [vmem:[%s5542_s25 + $0x109] sm:$0xff]  ;;  %v275_v37 = vld [vmem:[%s5542_s25 + $0x81] sm:$0xff] }
  0x1b   : > { %4938 = vmatprep.mubr.msk.f32.mxu0 %vm297_vm1, %v265_v17  ;;  %4965 = vmatprep.mubr.msk.f32.mxu1 %vm297_vm1, %v283_v18  ;;  %v293_v38 = vld [vmem:[%s5542_s25 + $0x111] sm:$0xff]  ;;  %v276_v39 = vld [vmem:[%s5542_s25 + $0x89] sm:$0xff]  ;;  %v294_v40 = vld [vmem:[%s5542_s25 + $0x119] sm:$0xff] }
  0x1c   : > { %v222_v41 = vld [vmem:[%s5542_s25] sm:$0xff]  ;;  %v223_v43 = vld [vmem:[%s5542_s25 + $0x8] sm:$0xff]  ;;  %v224_v45 = vld [vmem:[%s5542_s25 + $0x10] sm:$0xff] }
  0x1d   : > { %v1011_v42 = vld [vmem:[%s5542_s25 + $0x2] sm:$0xff]  ;;  %v1012_v44 = vld [vmem:[%s5542_s25 + $0xa] sm:$0xff]  ;;  %v5640_v46 = vld [vmem:[%s5542_s25 + $0x12] sm:$0xff] }
  0x1e   : > { %4939 = vmatmul.mubr.msk.f32.gmra.mxu0 %vm297_vm1, %v266_v19  ;;  %4966 = vmatmul.mubr.msk.f32.gmra.mxu1 %vm297_vm1, %v284_v20  ;;  %v225_v49 = vld [vmem:[%s5542_s25 + $0x18] sm:$0xff]  ;;  %v226_v51 = vld [vmem:[%s5542_s25 + $0x20] sm:$0xff]  ;;  %v227_v53 = vld [vmem:[%s5542_s25 + $0x28] sm:$0xff] }
  0x1f   : > { %4941 = vmatprep.mubr.msk.f32.mxu0 %vm297_vm1, %v267_v21  ;;  %4968 = vmatprep.mubr.msk.f32.mxu1 %vm297_vm1, %v285_v22  ;;  %v5660_v50 = vld [vmem:[%s5542_s25 + $0x1a] sm:$0xff]  ;;  %v5667_v52 = vld [vmem:[%s5542_s25 + $0x22] sm:$0xff]  ;;  %v5681_v54 = vld [vmem:[%s5542_s25 + $0x2a] sm:$0xff] }
  0x20   : > { %v228_v55 = vld [vmem:[%s5542_s25 + $0x30] sm:$0xff]  ;;  %v229_v57 = vld [vmem:[%s5542_s25 + $0x38] sm:$0xff]  ;;  %v230_v59 = vld [vmem:[%s5542_s25 + $0x40] sm:$0xff] }
  0x21   : > { %v5685_v56 = vld [vmem:[%s5542_s25 + $0x32] sm:$0xff]  ;;  %v5695_v58 = vld [vmem:[%s5542_s25 + $0x3a] sm:$0xff]  ;;  %v5699_v60 = vld [vmem:[%s5542_s25 + $0x42] sm:$0xff] }
  0x22   : > { %4942 = vmatmul.mubr.msk.f32.gmra.mxu0 %vm297_vm1, %v268_v23  ;;  %4969 = vmatmul.mubr.msk.f32.gmra.mxu1 %vm297_vm1, %v286_v24  ;;  %v231_v61 = vld [vmem:[%s5542_s25 + $0x48] sm:$0xff]  ;;  %v232_v63 = vld [vmem:[%s5542_s25 + $0x50] sm:$0xff]  ;;  %v233_v1 = vld [vmem:[%s5542_s25 + $0x58] sm:$0xff] }
  0x23   : > { %4944 = vmatprep.mubr.msk.f32.mxu0 %vm297_vm1, %v269_v25  ;;  %4971 = vmatprep.mubr.msk.f32.mxu1 %vm297_vm1, %v287_v26  ;;  %v5709_v62 = vld [vmem:[%s5542_s25 + $0x4a] sm:$0xff]  ;;  %v5713_v0 = vld [vmem:[%s5542_s25 + $0x52] sm:$0xff]  ;;  %v5723_v2 = vld [vmem:[%s5542_s25 + $0x5a] sm:$0xff] }
  0x24   : > { %v234_v3 = vld [vmem:[%s5542_s25 + $0x60] sm:$0xff]  ;;  %v235_v5 = vld [vmem:[%s5542_s25 + $0x68] sm:$0xff]  ;;  %v236_v7 = vld [vmem:[%s5542_s25 + $0x70] sm:$0xff] }
  0x25   : > { %v5727_v4 = vld [vmem:[%s5542_s25 + $0x62] sm:$0xff]  ;;  %v5737_v6 = vld [vmem:[%s5542_s25 + $0x6a] sm:$0xff]  ;;  %v5741_v8 = vld [vmem:[%s5542_s25 + $0x72] sm:$0xff] }
  0x26   : > { %4945 = vmatmul.mubr.msk.f32.gmra.mxu0 %vm297_vm1, %v270_v27  ;;  %4972 = vmatmul.mubr.msk.f32.gmra.mxu1 %vm297_vm1, %v288_v28  ;;  %v238_v11 = vld [vmem:[%s5542_s25 + $0x80] sm:$0xff]  ;;  %v239_v13 = vld [vmem:[%s5542_s25 + $0x88] sm:$0xff]  ;;  %v240_v15 = vld [vmem:[%s5542_s25 + $0x90] sm:$0xff] }
  0x27   : > { %4947 = vmatprep.mubr.msk.f32.mxu0 %vm297_vm1, %v271_v29  ;;  %4974 = vmatprep.mubr.msk.f32.mxu1 %vm297_vm1, %v289_v30  ;;  %v5755_v12 = vld [vmem:[%s5542_s25 + $0x82] sm:$0xff]  ;;  %v5765_v14 = vld [vmem:[%s5542_s25 + $0x8a] sm:$0xff]  ;;  %v5769_v16 = vld [vmem:[%s5542_s25 + $0x92] sm:$0xff] }
  0x28   : > { %v241_v17 = vld [vmem:[%s5542_s25 + $0x98] sm:$0xff]  ;;  %v242_v19 = vld [vmem:[%s5542_s25 + $0xa0] sm:$0xff]  ;;  %v243_v21 = vld [vmem:[%s5542_s25 + $0xa8] sm:$0xff] }
  0x29   : > { %v5779_v18 = vld [vmem:[%s5542_s25 + $0x9a] sm:$0xff]  ;;  %v5783_v20 = vld [vmem:[%s5542_s25 + $0xa2] sm:$0xff]  ;;  %v5793_v22 = vld [vmem:[%s5542_s25 + $0xaa] sm:$0xff] }
  0x2a   : > { %4948 = vmatmul.mubr.msk.f32.gmra.mxu0 %vm297_vm1, %v272_v31  ;;  %4975 = vmatmul.mubr.msk.f32.gmra.mxu1 %vm297_vm1, %v290_v32  ;;  %v244_v23 = vld [vmem:[%s5542_s25 + $0xb0] sm:$0xff]  ;;  %v245_v25 = vld [vmem:[%s5542_s25 + $0xb8] sm:$0xff]  ;;  %v246_v27 = vld [vmem:[%s5542_s25 + $0xc0] sm:$0xff] }
  0x2b   : > { %4950 = vmatprep.mubr.msk.f32.mxu0 %vm297_vm1, %v273_v33  ;;  %4977 = vmatprep.mubr.msk.f32.mxu1 %vm297_vm1, %v291_v34  ;;  %v5797_v24 = vld [vmem:[%s5542_s25 + $0xb2] sm:$0xff]  ;;  %v5807_v26 = vld [vmem:[%s5542_s25 + $0xba] sm:$0xff]  ;;  %v5811_v28 = vld [vmem:[%s5542_s25 + $0xc2] sm:$0xff] }
  0x2c   : > { %v247_v29 = vld [vmem:[%s5542_s25 + $0xc8] sm:$0xff]  ;;  %v248_v31 = vld [vmem:[%s5542_s25 + $0xd0] sm:$0xff]  ;;  %v249_v33 = vld [vmem:[%s5542_s25 + $0xd8] sm:$0xff] }
  0x2d   : > { %v5821_v30 = vld [vmem:[%s5542_s25 + $0xca] sm:$0xff]  ;;  %v5825_v32 = vld [vmem:[%s5542_s25 + $0xd2] sm:$0xff]  ;;  %v5835_v34 = vld [vmem:[%s5542_s25 + $0xda] sm:$0xff] }
  0x2e   : > { %4951 = vmatmul.mubr.msk.f32.gmra.mxu0 %vm297_vm1, %v274_v35  ;;  %4978 = vmatmul.mubr.msk.f32.gmra.mxu1 %vm297_vm1, %v292_v36  ;;  %v250_v35 = vld [vmem:[%s5542_s25 + $0xe0] sm:$0xff] }
  0x2f   : > { %4953 = vmatprep.mubr.msk.f32.mxu0 %vm297_vm1, %v275_v37  ;;  %4980 = vmatprep.mubr.msk.f32.mxu1 %vm297_vm1, %v293_v38  ;;  %v5839_v36 = vld [vmem:[%s5542_s25 + $0xe2] sm:$0xff]  ;;  %v5849_v38 = vld [vmem:[%s5542_s25 + $0xea] sm:$0xff] }
  0x30   : > { %v251_v37 = vld [vmem:[%s5542_s25 + $0xe8] sm:$0xff] }
  0x32   : > { %4954 = vmatmul.mubr.msk.f32.gmra.mxu0 %vm297_vm1, %v276_v39  ;;  %4981 = vmatmul.mubr.msk.f32.gmra.mxu1 %vm297_vm1, %v294_v40  ;;  %v252_v39 = vld [vmem:[%s5542_s25 + $0xf0] sm:$0xff] }
  0x33   : > { %4985 = vmatprep.mubr.msk.f32.mxu1 %vm297_vm1, %v222_v41  ;;  %5041 = vmatprep.mubr.msk.f32.mxu0 %vm297_vm1, %v1011_v42  ;;  %v5853_v40 = vld [vmem:[%s5542_s25 + $0xf2] sm:$0xff]  ;;  %v5863_v42 = vld [vmem:[%s5542_s25 + $0xfa] sm:$0xff] }
  0x34   : > { %v253_v41 = vld [vmem:[%s5542_s25 + $0xf8] sm:$0xff] }
  0x36   : > { %4986 = vmatmul.mubr.msk.f32.vlgmr.msra.gmra.mxu1 %vm297_vm1, %v223_v43  ;;  %5042 = vmatmul.mubr.msk.f32.vlgmr.msra.gmra.mxu0 %vm297_vm1, %v1012_v44  ;;  %v254_v43 = vld [vmem:[%s5542_s25 + $0x100] sm:$0xff] }
  0x37   : > { %5096 = vmatpush3.msk.msra.mxu1 %vm406_vm0, %v5557_v9  ;;  %5152 = vmatpush3.msk.msra.mxu0 %vm406_vm0, %v5562_v10  ;;  %v237_v9 = vld [vmem:[%s5542_s25 + $0x78] sm:$0xff]  ;;  %v5867_v44 = vld [vmem:[%s5542_s25 + $0x102] sm:$0xff] }
  0x38   : > { %4988 = vmatprep.mubr.msk.f32.mxu1 %vm297_vm1, %v224_v45  ;;  %5044 = vmatprep.mubr.msk.f32.mxu0 %vm297_vm1, %v5640_v46  ;;  %v5751_v10 = vld [vmem:[%s5542_s25 + $0x7a] sm:$0xff]  ;;  %v255_v45 = vld [vmem:[%s5542_s25 + $0x108] sm:$0xff] }
  0x39   : > { %5207 = vmatprep.subr.msk.mxu1 %vm406_vm0, %v5647_v47  ;;  %5263 = vmatprep.subr.msk.mxu0 %vm406_vm0, %v5652_v48 }
  0x3a   : > { %4989 = vmatmul.mubr.msk.f32.gmra.mxu1 %vm297_vm1, %v225_v49  ;;  %5045 = vmatmul.mubr.msk.f32.gmra.mxu0 %vm297_vm1, %v5660_v50  ;;  %v5877_v49 = vld [vmem:[%s5542_s25 + $0x10a] sm:$0xff] }
  0x3b   : > { %4991 = vmatprep.mubr.msk.f32.mxu1 %vm297_vm1, %v226_v51  ;;  %5047 = vmatprep.mubr.msk.f32.mxu0 %vm297_vm1, %v5667_v52  ;;  %v256_v51 = vld [vmem:[%s5542_s25 + $0x110] sm:$0xff] }
  0x3e   : > { %4992 = vmatmul.mubr.msk.f32.gmra.mxu1 %vm297_vm1, %v227_v53  ;;  %5048 = vmatmul.mubr.msk.f32.gmra.mxu0 %vm297_vm1, %v5681_v54  ;;  %v5881_v53 = vld [vmem:[%s5542_s25 + $0x112] sm:$0xff] }
  0x3f   : > { %4994 = vmatprep.mubr.msk.f32.mxu1 %vm297_vm1, %v228_v55  ;;  %5050 = vmatprep.mubr.msk.f32.mxu0 %vm297_vm1, %v5685_v56  ;;  %v257_v55 = vld [vmem:[%s5542_s25 + $0x118] sm:$0xff] }
  0x42   : > { %4995 = vmatmul.mubr.msk.f32.gmra.mxu1 %vm297_vm1, %v229_v57  ;;  %5051 = vmatmul.mubr.msk.f32.gmra.mxu0 %vm297_vm1, %v5695_v58  ;;  %v5891_v57 = vld [vmem:[%s5542_s25 + $0x11a] sm:$0xff] }
  0x43   : > { %4997 = vmatprep.mubr.msk.f32.mxu1 %vm297_vm1, %v230_v59  ;;  %5053 = vmatprep.mubr.msk.f32.mxu0 %vm297_vm1, %v5699_v60  ;;  %v1871_v59 = vld [vmem:[%s5542_s25 + $0x13] sm:$0xff] }
  0x46   : > { %4998 = vmatmul.mubr.msk.f32.gmra.mxu1 %vm297_vm1, %v231_v61  ;;  %5054 = vmatmul.mubr.msk.f32.gmra.mxu0 %vm297_vm1, %v5709_v62  ;;  %v1872_v61 = vld [vmem:[%s5542_s25 + $0x1b] sm:$0xff] }
  0x47   : > { %5000 = vmatprep.mubr.msk.f32.mxu1 %vm297_vm1, %v232_v63  ;;  %5056 = vmatprep.mubr.msk.f32.mxu0 %vm297_vm1, %v5713_v0  ;;  %v1873_v63 = vld [vmem:[%s5542_s25 + $0x23] sm:$0xff] }
  0x4a   : > { %5001 = vmatmul.mubr.msk.f32.gmra.mxu1 %vm297_vm1, %v233_v1  ;;  %5057 = vmatmul.mubr.msk.f32.gmra.mxu0 %vm297_vm1, %v5723_v2  ;;  %v5908_v1 = vld [vmem:[%s6841_s1 + $0x1c] sm:$0xf] }
  0x4b   : > { %5003 = vmatprep.mubr.msk.f32.mxu1 %vm297_vm1, %v234_v3  ;;  %5059 = vmatprep.mubr.msk.f32.mxu0 %vm297_vm1, %v5727_v4  ;;  %v1875_v3 = vld [vmem:[%s5542_s25 + $0x33] sm:$0xff] }
  0x4e   : > { %5004 = vmatmul.mubr.msk.f32.gmra.mxu1 %vm297_vm1, %v235_v5  ;;  %5060 = vmatmul.mubr.msk.f32.gmra.mxu0 %vm297_vm1, %v5737_v6  ;;  %v1887_v5 = vld [vmem:[%s5542_s25 + $0x93] sm:$0xff] }
  0x4f   : > { %5006 = vmatprep.mubr.msk.f32.mxu1 %vm297_vm1, %v236_v7  ;;  %5062 = vmatprep.mubr.msk.f32.mxu0 %vm297_vm1, %v5741_v8  ;;  %v1889_v7 = vld [vmem:[%s5542_s25 + $0xa3] sm:$0xff] }
  0x52   : > { %5007 = vmatmul.mubr.msk.f32.gmra.mxu1 %vm297_vm1, %v237_v9  ;;  %5063 = vmatmul.mubr.msk.f32.gmra.mxu0 %vm297_vm1, %v5751_v10  ;;  %v1891_v9 = vld [vmem:[%s5542_s25 + $0xb3] sm:$0xff] }
  0x53   : > { %5009 = vmatprep.mubr.msk.f32.mxu1 %vm297_vm1, %v238_v11  ;;  %5065 = vmatprep.mubr.msk.f32.mxu0 %vm297_vm1, %v5755_v12  ;;  %v1893_v11 = vld [vmem:[%s5542_s25 + $0xc3] sm:$0xff] }
  0x56   : > { %5010 = vmatmul.mubr.msk.f32.gmra.mxu1 %vm297_vm1, %v239_v13  ;;  %5066 = vmatmul.mubr.msk.f32.gmra.mxu0 %vm297_vm1, %v5765_v14  ;;  %v1895_v13 = vld [vmem:[%s5542_s25 + $0xd3] sm:$0xff] }
  0x57   : > { %5012 = vmatprep.mubr.msk.f32.mxu1 %vm297_vm1, %v240_v15  ;;  %5068 = vmatprep.mubr.msk.f32.mxu0 %vm297_vm1, %v5769_v16  ;;  %v1897_v15 = vld [vmem:[%s5542_s25 + $0xe3] sm:$0xff] }
  0x5a   : > { %5013 = vmatmul.mubr.msk.f32.gmra.mxu1 %vm297_vm1, %v241_v17  ;;  %5069 = vmatmul.mubr.msk.f32.gmra.mxu0 %vm297_vm1, %v5779_v18  ;;  %v1899_v17 = vld [vmem:[%s5542_s25 + $0xf3] sm:$0xff] }
  0x5b   : > { %5015 = vmatprep.mubr.msk.f32.mxu1 %vm297_vm1, %v242_v19  ;;  %5071 = vmatprep.mubr.msk.f32.mxu0 %vm297_vm1, %v5783_v20  ;;  %v1901_v19 = vld [vmem:[%s5542_s25 + $0x103] sm:$0xff] }
  0x5e   : > { %5016 = vmatmul.mubr.msk.f32.gmra.mxu1 %vm297_vm1, %v243_v21  ;;  %5072 = vmatmul.mubr.msk.f32.gmra.mxu0 %vm297_vm1, %v5793_v22  ;;  %v1903_v21 = vld [vmem:[%s5542_s25 + $0x113] sm:$0xff] }
  0x5f   : > { %5018 = vmatprep.mubr.msk.f32.mxu1 %vm297_vm1, %v244_v23  ;;  %5074 = vmatprep.mubr.msk.f32.mxu0 %vm297_vm1, %v5797_v24  ;;  %v1475_v23 = vld [vmem:[%s5542_s25 + $0x122] sm:$0xff] }
  0x62   : > { %5019 = vmatmul.mubr.msk.f32.gmra.mxu1 %vm297_vm1, %v245_v25  ;;  %5075 = vmatmul.mubr.msk.f32.gmra.mxu0 %vm297_vm1, %v5807_v26  ;;  %v1476_v25 = vld [vmem:[%s5542_s25 + $0x12a] sm:$0xff] }
  0x63   : > { %5021 = vmatprep.mubr.msk.f32.mxu1 %vm297_vm1, %v246_v27  ;;  %5077 = vmatprep.mubr.msk.f32.mxu0 %vm297_vm1, %v5811_v28  ;;  %v2301_v27 = vld [vmem:[%s5542_s25 + $0x14] sm:$0xff] }
  0x66   : > { %5022 = vmatmul.mubr.msk.f32.gmra.mxu1 %vm297_vm1, %v247_v29  ;;  %5078 = vmatmul.mubr.msk.f32.gmra.mxu0 %vm297_vm1, %v5821_v30  ;;  %v2302_v29 = vld [vmem:[%s5542_s25 + $0x1c] sm:$0xff] }
  0x67   : > { %5024 = vmatprep.mubr.msk.f32.mxu1 %vm297_vm1, %v248_v31  ;;  %5080 = vmatprep.mubr.msk.f32.mxu0 %vm297_vm1, %v5825_v32  ;;  %v2733_v31 = vld [vmem:[%s5542_s25 + $0x34] sm:$0xff] }
  0x6a   : > { %5025 = vmatmul.mubr.msk.f32.gmra.mxu1 %vm297_vm1, %v249_v33  ;;  %5081 = vmatmul.mubr.msk.f32.gmra.mxu0 %vm297_vm1, %v5835_v34  ;;  %v2735_v33 = vld [vmem:[%s5542_s25 + $0x44] sm:$0xff] }
  0x6b   : > { %5027 = vmatprep.mubr.msk.f32.mxu1 %vm297_vm1, %v250_v35  ;;  %5083 = vmatprep.mubr.msk.f32.mxu0 %vm297_vm1, %v5839_v36  ;;  %v2737_v35 = vld [vmem:[%s5542_s25 + $0x54] sm:$0xff] }
  0x6e   : > { %5028 = vmatmul.mubr.msk.f32.gmra.mxu1 %vm297_vm1, %v251_v37  ;;  %5084 = vmatmul.mubr.msk.f32.gmra.mxu0 %vm297_vm1, %v5849_v38  ;;  %v2739_v37 = vld [vmem:[%s5542_s25 + $0x64] sm:$0xff] }
  0x6f   : > { %5030 = vmatprep.mubr.msk.f32.mxu1 %vm297_vm1, %v252_v39  ;;  %5086 = vmatprep.mubr.msk.f32.mxu0 %vm297_vm1, %v5853_v40 }
  0x72   : > { %5031 = vmatmul.mubr.msk.f32.gmra.mxu1 %vm297_vm1, %v253_v41  ;;  %5087 = vmatmul.mubr.msk.f32.gmra.mxu0 %vm297_vm1, %v5863_v42 }
  0x73   : > { %5033 = vmatprep.mubr.msk.f32.mxu1 %vm297_vm1, %v254_v43  ;;  %5089 = vmatprep.mubr.msk.f32.mxu0 %vm297_vm1, %v5867_v44  ;;  %v2741_v43 = vld [vmem:[%s5542_s25 + $0x74] sm:$0xff] }
  0x76   : > { %5034 = vmatmul.mubr.msk.f32.gmra.mxu1 %vm297_vm1, %v255_v45  ;;  %5090 = vmatmul.mubr.msk.f32.gmra.mxu0 %vm297_vm1, %v5877_v49 }
  0x77   : > { %5036 = vmatprep.mubr.msk.f32.mxu1 %vm297_vm1, %v256_v51  ;;  %5092 = vmatprep.mubr.msk.f32.mxu0 %vm297_vm1, %v5881_v53 }
  0x7a   : > { %5037 = vmatmul.mubr.msk.f32.gmra.mxu1 %vm297_vm1, %v257_v55  ;;  %5093 = vmatmul.mubr.msk.f32.gmra.mxu0 %vm297_vm1, %v5891_v57  ;;  %v2743_v55 = vld [vmem:[%s5542_s25 + $0x84] sm:$0xff] }
  0x7b   : > { %5097 = vmatprep.mubr.msk.f32.mxu1 %vm297_vm1, %v5640_v46  ;;  %5153 = vmatprep.mubr.msk.f32.mxu0 %vm297_vm1, %v1871_v59  ;;  %v5913_v46 = vld [vmem:[%s6841_s1 + $0x20] sm:$0xf] }
  0x7e   : > { %5098 = vmatmul.mubr.msk.f32.vlgmr.msra.gmra.mxu1 %vm297_vm1, %v5660_v50  ;;  %5154 = vmatmul.mubr.msk.f32.vlgmr.msra.gmra.mxu0 %vm297_vm1, %v1872_v61  ;;  %v1874_v50 = vld [vmem:[%s5542_s25 + $0x2b] sm:$0xff] }
  0x7f   : > { %5208 = vmatpush3.msk.msra.mxu1 %vm406_vm0, %v5647_v47  ;;  %5264 = vmatpush3.msk.msra.mxu0 %vm406_vm0, %v5652_v48  ;;  %v1876_v47 = vld [vmem:[%s5542_s25 + $0x3b] sm:$0xff]  ;;  %v1877_v48 = vld [vmem:[%s5542_s25 + $0x43] sm:$0xff]  ;;  %v2744_v61 = vld [vmem:[%s5542_s25 + $0x8c] sm:$0xff] }
  0x80   : > { %5100 = vmatprep.mubr.msk.f32.mxu1 %vm297_vm1, %v5667_v52  ;;  %5156 = vmatprep.mubr.msk.f32.mxu0 %vm297_vm1, %v1873_v63  ;;  %v1878_v52 = vld [vmem:[%s5542_s25 + $0x4b] sm:$0xff] }
  0x81   : > { %5319 = vmatprep.subr.msk.mxu1 %vm406_vm0, %v5908_v1  ;;  %5375 = vmatprep.subr.msk.mxu0 %vm406_vm0, %v5913_v46 }
  0x82   : > { %5101 = vmatmul.mubr.msk.f32.gmra.mxu1 %vm297_vm1, %v5681_v54  ;;  %5157 = vmatmul.mubr.msk.f32.gmra.mxu0 %vm297_vm1, %v1874_v50  ;;  %v1879_v54 = vld [vmem:[%s5542_s25 + $0x53] sm:$0xff] }
  0x83   : > { %5103 = vmatprep.mubr.msk.f32.mxu1 %vm297_vm1, %v5685_v56  ;;  %5159 = vmatprep.mubr.msk.f32.mxu0 %vm297_vm1, %v1875_v3  ;;  %v1880_v56 = vld [vmem:[%s5542_s25 + $0x5b] sm:$0xff] }
  0x86   : > { %5104 = vmatmul.mubr.msk.f32.gmra.mxu1 %vm297_vm1, %v5695_v58  ;;  %5160 = vmatmul.mubr.msk.f32.gmra.mxu0 %vm297_vm1, %v1876_v47  ;;  %v1881_v58 = vld [vmem:[%s5542_s25 + $0x63] sm:$0xff] }
  0x87   : > { %5106 = vmatprep.mubr.msk.f32.mxu1 %vm297_vm1, %v5699_v60  ;;  %5162 = vmatprep.mubr.msk.f32.mxu0 %vm297_vm1, %v1877_v48  ;;  %v1882_v60 = vld [vmem:[%s5542_s25 + $0x6b] sm:$0xff]  ;;  %v2746_v47 = vld [vmem:[%s5542_s25 + $0x9c] sm:$0xff] }
  0x8a   : > { %5107 = vmatmul.mubr.msk.f32.gmra.mxu1 %vm297_vm1, %v5709_v62  ;;  %5163 = vmatmul.mubr.msk.f32.gmra.mxu0 %vm297_vm1, %v1878_v52  ;;  %v1883_v62 = vld [vmem:[%s5542_s25 + $0x73] sm:$0xff] }
  0x8b   : > { %5109 = vmatprep.mubr.msk.f32.mxu1 %vm297_vm1, %v5713_v0  ;;  %5165 = vmatprep.mubr.msk.f32.mxu0 %vm297_vm1, %v1879_v54  ;;  %v1884_v0 = vld [vmem:[%s5542_s25 + $0x7b] sm:$0xff]  ;;  %v2747_v54 = vld [vmem:[%s5542_s25 + $0xa4] sm:$0xff] }
  0x8e   : > { %5110 = vmatmul.mubr.msk.f32.gmra.mxu1 %vm297_vm1, %v5723_v2  ;;  %5166 = vmatmul.mubr.msk.f32.gmra.mxu0 %vm297_vm1, %v1880_v56  ;;  %v1885_v2 = vld [vmem:[%s5542_s25 + $0x83] sm:$0xff] }
  0x8f   : > { %5112 = vmatprep.mubr.msk.f32.mxu1 %vm297_vm1, %v5727_v4  ;;  %5168 = vmatprep.mubr.msk.f32.mxu0 %vm297_vm1, %v1881_v58  ;;  %v1886_v4 = vld [vmem:[%s5542_s25 + $0x8b] sm:$0xff] }
  0x92   : > { %5113 = vmatmul.mubr.msk.f32.gmra.mxu1 %vm297_vm1, %v5737_v6  ;;  %5169 = vmatmul.mubr.msk.f32.gmra.mxu0 %vm297_vm1, %v1882_v60  ;;  %v1888_v6 = vld [vmem:[%s5542_s25 + $0x9b] sm:$0xff]  ;;  %v2748_v60 = vld [vmem:[%s5542_s25 + $0xac] sm:$0xff] }
  0x93   : > { %5115 = vmatprep.mubr.msk.f32.mxu1 %vm297_vm1, %v5741_v8  ;;  %5171 = vmatprep.mubr.msk.f32.mxu0 %vm297_vm1, %v1883_v62  ;;  %v1890_v8 = vld [vmem:[%s5542_s25 + $0xab] sm:$0xff] }
  0x96   : > { %5116 = vmatmul.mubr.msk.f32.gmra.mxu1 %vm297_vm1, %v5751_v10  ;;  %5172 = vmatmul.mubr.msk.f32.gmra.mxu0 %vm297_vm1, %v1884_v0  ;;  %v1892_v10 = vld [vmem:[%s5542_s25 + $0xbb] sm:$0xff] }
  0x97   : > { %5118 = vmatprep.mubr.msk.f32.mxu1 %vm297_vm1, %v5755_v12  ;;  %5174 = vmatprep.mubr.msk.f32.mxu0 %vm297_vm1, %v1885_v2  ;;  %v1894_v12 = vld [vmem:[%s5542_s25 + $0xcb] sm:$0xff]  ;;  %v2749_v2 = vld [vmem:[%s5542_s25 + $0xb4] sm:$0xff] }
  0x9a   : > { %5119 = vmatmul.mubr.msk.f32.gmra.mxu1 %vm297_vm1, %v5765_v14  ;;  %5175 = vmatmul.mubr.msk.f32.gmra.mxu0 %vm297_vm1, %v1886_v4  ;;  %v1896_v14 = vld [vmem:[%s5542_s25 + $0xdb] sm:$0xff] }
  0x9b   : > { %5121 = vmatprep.mubr.msk.f32.mxu1 %vm297_vm1, %v5769_v16  ;;  %5177 = vmatprep.mubr.msk.f32.mxu0 %vm297_vm1, %v1887_v5  ;;  %v1898_v16 = vld [vmem:[%s5542_s25 + $0xeb] sm:$0xff] }
  0x9e   : > { %5122 = vmatmul.mubr.msk.f32.gmra.mxu1 %vm297_vm1, %v5779_v18  ;;  %5178 = vmatmul.mubr.msk.f32.gmra.mxu0 %vm297_vm1, %v1888_v6  ;;  %v1900_v18 = vld [vmem:[%s5542_s25 + $0xfb] sm:$0xff] }
  0x9f   : > { %5124 = vmatprep.mubr.msk.f32.mxu1 %vm297_vm1, %v5783_v20  ;;  %5180 = vmatprep.mubr.msk.f32.mxu0 %vm297_vm1, %v1889_v7  ;;  %v1902_v20 = vld [vmem:[%s5542_s25 + $0x10b] sm:$0xff]  ;;  %v2750_v6 = vld [vmem:[%s5542_s25 + $0xbc] sm:$0xff] }
  0xa2   : > { %5125 = vmatmul.mubr.msk.f32.gmra.mxu1 %vm297_vm1, %v5793_v22  ;;  %5181 = vmatmul.mubr.msk.f32.gmra.mxu0 %vm297_vm1, %v1890_v8  ;;  %v1904_v22 = vld [vmem:[%s5542_s25 + $0x11b] sm:$0xff] }
  0xa3   : > { %5127 = vmatprep.mubr.msk.f32.mxu1 %vm297_vm1, %v5797_v24  ;;  %5183 = vmatprep.mubr.msk.f32.mxu0 %vm297_vm1, %v1891_v9  ;;  %v1905_v24 = vld [vmem:[%s5542_s25 + $0x123] sm:$0xff] }
  0xa4   : > { %v2751_v9 = vld [vmem:[%s5542_s25 + $0xc4] sm:$0xff] }
  0xa6   : > { %5128 = vmatmul.mubr.msk.f32.gmra.mxu1 %vm297_vm1, %v5807_v26  ;;  %5184 = vmatmul.mubr.msk.f32.gmra.mxu0 %vm297_vm1, %v1892_v10  ;;  %v1906_v26 = vld [vmem:[%s5542_s25 + $0x12b] sm:$0xff] }
  0xa7   : > { %5130 = vmatprep.mubr.msk.f32.mxu1 %vm297_vm1, %v5811_v28  ;;  %5186 = vmatprep.mubr.msk.f32.mxu0 %vm297_vm1, %v1893_v11  ;;  %v2731_v28 = vld [vmem:[%s5542_s25 + $0x24] sm:$0xff] }
  0xaa   : > { %5131 = vmatmul.mubr.msk.f32.gmra.mxu1 %vm297_vm1, %v5821_v30  ;;  %5187 = vmatmul.mubr.msk.f32.gmra.mxu0 %vm297_vm1, %v1894_v12  ;;  %v2732_v30 = vld [vmem:[%s5542_s25 + $0x2c] sm:$0xff] }
  0xab   : > { %5133 = vmatprep.mubr.msk.f32.mxu1 %vm297_vm1, %v5825_v32  ;;  %5189 = vmatprep.mubr.msk.f32.mxu0 %vm297_vm1, %v1895_v13  ;;  %v2734_v32 = vld [vmem:[%s5542_s25 + $0x3c] sm:$0xff]  ;;  %v2752_v12 = vld [vmem:[%s5542_s25 + $0xcc] sm:$0xff] }
  0xae   : > { %5134 = vmatmul.mubr.msk.f32.gmra.mxu1 %vm297_vm1, %v5835_v34  ;;  %5190 = vmatmul.mubr.msk.f32.gmra.mxu0 %vm297_vm1, %v1896_v14  ;;  %v2736_v34 = vld [vmem:[%s5542_s25 + $0x4c] sm:$0xff] }
  0xaf   : > { %5136 = vmatprep.mubr.msk.f32.mxu1 %vm297_vm1, %v5839_v36  ;;  %5192 = vmatprep.mubr.msk.f32.mxu0 %vm297_vm1, %v1897_v15  ;;  %v2738_v36 = vld [vmem:[%s5542_s25 + $0x5c] sm:$0xff]  ;;  %v2753_v15 = vld [vmem:[%s5542_s25 + $0xd4] sm:$0xff] }
  0xb2   : > { %5137 = vmatmul.mubr.msk.f32.gmra.mxu1 %vm297_vm1, %v5849_v38  ;;  %5193 = vmatmul.mubr.msk.f32.gmra.mxu0 %vm297_vm1, %v1898_v16 }
  0xb3   : > { %5139 = vmatprep.mubr.msk.f32.mxu1 %vm297_vm1, %v5853_v40  ;;  %5195 = vmatprep.mubr.msk.f32.mxu0 %vm297_vm1, %v1899_v17  ;;  %v2740_v40 = vld [vmem:[%s5542_s25 + $0x6c] sm:$0xff] }
  0xb6   : > { %5140 = vmatmul.mubr.msk.f32.gmra.mxu1 %vm297_vm1, %v5863_v42  ;;  %5196 = vmatmul.mubr.msk.f32.gmra.mxu0 %vm297_vm1, %v1900_v18  ;;  %v2754_v18 = vld [vmem:[%s5542_s25 + $0xdc] sm:$0xff] }
  0xb7   : > { %5142 = vmatprep.mubr.msk.f32.mxu1 %vm297_vm1, %v5867_v44  ;;  %5198 = vmatprep.mubr.msk.f32.mxu0 %vm297_vm1, %v1901_v19 }
  0xba   : > { %5143 = vmatmul.mubr.msk.f32.gmra.mxu1 %vm297_vm1, %v5877_v49  ;;  %5199 = vmatmul.mubr.msk.f32.gmra.mxu0 %vm297_vm1, %v1902_v20  ;;  %v2742_v49 = vld [vmem:[%s5542_s25 + $0x7c] sm:$0xff] }
  0xbb   : > { %5145 = vmatprep.mubr.msk.f32.mxu1 %vm297_vm1, %v5881_v53  ;;  %5201 = vmatprep.mubr.msk.f32.mxu0 %vm297_vm1, %v1903_v21  ;;  %v2755_v21 = vld [vmem:[%s5542_s25 + $0xe4] sm:$0xff] }
  0xbe   : > { %5146 = vmatmul.mubr.msk.f32.gmra.mxu1 %vm297_vm1, %v5891_v57  ;;  %5202 = vmatmul.mubr.msk.f32.gmra.mxu0 %vm297_vm1, %v1904_v22 }
  0xbf   : > { %5148 = vmatprep.mubr.msk.f32.mxu1 %vm297_vm1, %v1475_v23  ;;  %5204 = vmatprep.mubr.msk.f32.mxu0 %vm297_vm1, %v1905_v24  ;;  %v2756_v24 = vld [vmem:[%s5542_s25 + $0xec] sm:$0xff] }
  0xc2   : > { %5149 = vmatmul.mubr.msk.f32.gmra.mxu1 %vm297_vm1, %v1476_v25  ;;  %5205 = vmatmul.mubr.msk.f32.gmra.mxu0 %vm297_vm1, %v1906_v26 }
  0xc3   : > { %5209 = vmatprep.mubr.msk.f32.mxu1 %vm297_vm1, %v2301_v27  ;;  %5265 = vmatprep.mubr.msk.f32.mxu0 %vm297_vm1, %v2731_v28  ;;  %v2757_v27 = vld [vmem:[%s5542_s25 + $0xf4] sm:$0xff] }
  0xc6   : > { %5210 = vmatmul.mubr.msk.f32.vlgmr.msra.gmra.mxu1 %vm297_vm1, %v2302_v29  ;;  %5266 = vmatmul.mubr.msk.f32.vlgmr.msra.gmra.mxu0 %vm297_vm1, %v2732_v30 }
  0xc7   : > { %5320 = vmatpush3.msk.msra.mxu1 %vm406_vm0, %v5908_v1  ;;  %5376 = vmatpush3.msk.msra.mxu0 %vm406_vm0, %v5913_v46  ;;  %v2745_v46 = vld [vmem:[%s5542_s25 + $0x94] sm:$0xff] }
  0xc8   : > { %5212 = vmatprep.mubr.msk.f32.mxu1 %vm297_vm1, %v2731_v28  ;;  %5268 = vmatprep.mubr.msk.f32.mxu0 %vm297_vm1, %v2733_v31 }
  0xca   : > { %5213 = vmatmul.mubr.msk.f32.gmra.mxu1 %vm297_vm1, %v2732_v30  ;;  %5269 = vmatmul.mubr.msk.f32.gmra.mxu0 %vm297_vm1, %v2734_v32 }
  0xcb   : > { %5215 = vmatprep.mubr.msk.f32.mxu1 %vm297_vm1, %v2733_v31  ;;  %5271 = vmatprep.mubr.msk.f32.mxu0 %vm297_vm1, %v2735_v33  ;;  %v2758_v31 = vld [vmem:[%s5542_s25 + $0xfc] sm:$0xff] }
  0xce   : > { %5216 = vmatmul.mubr.msk.f32.gmra.mxu1 %vm297_vm1, %v2734_v32  ;;  %5272 = vmatmul.mubr.msk.f32.gmra.mxu0 %vm297_vm1, %v2736_v34 }
  0xcf   : > { %5218 = vmatprep.mubr.msk.f32.mxu1 %vm297_vm1, %v2735_v33  ;;  %5274 = vmatprep.mubr.msk.f32.mxu0 %vm297_vm1, %v2737_v35 }
  0xd2   : > { %v6087_v38 = vpop.f32.mrf.mxu0  ;;  %v6089_v39 = vpop.f32.mrf.mxu1  ;;  %5219 = vmatmul.mubr.msk.f32.gmra.mxu1 %vm297_vm1, %v2736_v34  ;;  %5275 = vmatmul.mubr.msk.f32.gmra.mxu0 %vm297_vm1, %v2738_v36  ;;  %v2759_v34 = vld [vmem:[%s5542_s25 + $0x104] sm:$0xff] }
  0xd3   : > { %5221 = vmatprep.mubr.msk.f32.mxu1 %vm297_vm1, %v2737_v35  ;;  %5277 = vmatprep.mubr.msk.f32.mxu0 %vm297_vm1, %v2739_v37 }
  0xd4   : > { %v6096_v41 = vpop.f32.mrf.mxu0  ;;  %v6098_v42 = vpop.f32.mrf.mxu1 }
  0xd6   : > { %v6101_v44 = vpop.f32.mrf.mxu0  ;;  %v6103_v45 = vpop.f32.mrf.mxu1  ;;  %5222 = vmatmul.mubr.msk.f32.gmra.mxu1 %vm297_vm1, %v2738_v36  ;;  %5278 = vmatmul.mubr.msk.f32.gmra.mxu0 %vm297_vm1, %v2740_v40 }
  0xd7   : > { %5224 = vmatprep.mubr.msk.f32.mxu1 %vm297_vm1, %v2739_v37  ;;  %5280 = vmatprep.mubr.msk.f32.mxu0 %vm297_vm1, %v2741_v43 }
  0xd8   : > { %v6110_v51 = vpop.f32.mrf.mxu0  ;;  %v6112_v53 = vpop.f32.mrf.mxu1 }
  0xda   : > { %v6115_v57 = vpop.f32.mrf.mxu0  ;;  %v6117_v59 = vpop.f32.mrf.mxu1  ;;  %5225 = vmatmul.mubr.msk.f32.gmra.mxu1 %vm297_vm1, %v2740_v40  ;;  %5281 = vmatmul.mubr.msk.f32.gmra.mxu0 %vm297_vm1, %v2742_v49 }
  0xdb   : > { %5227 = vmatprep.mubr.msk.f32.mxu1 %vm297_vm1, %v2741_v43  ;;  %5283 = vmatprep.mubr.msk.f32.mxu0 %vm297_vm1, %v2743_v55 }
  0xdc   : > { %v6124_v63 = vpop.f32.mrf.mxu0  ;;  %v6126_v1 = vpop.f32.mrf.mxu1 }
  0xde   : > { %v6129_v50 = vpop.f32.mrf.mxu0  ;;  %v6131_v3 = vpop.f32.mrf.mxu1  ;;  %5228 = vmatmul.mubr.msk.f32.gmra.mxu1 %vm297_vm1, %v2742_v49  ;;  %5284 = vmatmul.mubr.msk.f32.gmra.mxu0 %vm297_vm1, %v2744_v61  ;;  %v2760_v49 = vld [vmem:[%s5542_s25 + $0x10c] sm:$0xff] }
  0xdf   : > { %5230 = vmatprep.mubr.msk.f32.mxu1 %vm297_vm1, %v2743_v55  ;;  %5286 = vmatprep.mubr.msk.f32.mxu0 %vm297_vm1, %v2745_v46 }
  0xe0   : > { %v6138_v48 = vpop.f32.mrf.mxu0  ;;  %v6140_v52 = vpop.f32.mrf.mxu1 }
  0xe2   : > { %v6143_v56 = vpop.f32.mrf.mxu0  ;;  %v6145_v58 = vpop.f32.mrf.mxu1  ;;  %5231 = vmatmul.mubr.msk.f32.gmra.mxu1 %vm297_vm1, %v2744_v61  ;;  %5287 = vmatmul.mubr.msk.f32.gmra.mxu0 %vm297_vm1, %v2746_v47 }
  0xe3   : > { %5233 = vmatprep.mubr.msk.f32.mxu1 %vm297_vm1, %v2745_v46  ;;  %5289 = vmatprep.mubr.msk.f32.mxu0 %vm297_vm1, %v2747_v54 }
  0xe4   : > { %v6152_v62 = vpop.f32.mrf.mxu0  ;;  %v6154_v0 = vpop.f32.mrf.mxu1 }
  0xe6   : > { %v6157_v4 = vpop.f32.mrf.mxu0  ;;  %v6159_v5 = vpop.f32.mrf.mxu1  ;;  %5234 = vmatmul.mubr.msk.f32.gmra.mxu1 %vm297_vm1, %v2746_v47  ;;  %5290 = vmatmul.mubr.msk.f32.gmra.mxu0 %vm297_vm1, %v2748_v60 }
  0xe7   : > { %5236 = vmatprep.mubr.msk.f32.mxu1 %vm297_vm1, %v2747_v54  ;;  %5292 = vmatprep.mubr.msk.f32.mxu0 %vm297_vm1, %v2749_v2 }
  0xe8   : > { %v6166_v7 = vpop.f32.mrf.mxu0  ;;  %v6168_v8 = vpop.f32.mrf.mxu1 }
  0xea   : > { %v6171_v10 = vpop.f32.mrf.mxu0  ;;  %v6173_v11 = vpop.f32.mrf.mxu1  ;;  %5237 = vmatmul.mubr.msk.f32.gmra.mxu1 %vm297_vm1, %v2748_v60  ;;  %5293 = vmatmul.mubr.msk.f32.gmra.mxu0 %vm297_vm1, %v2750_v6 }
  0xeb   : > { %5239 = vmatprep.mubr.msk.f32.mxu1 %vm297_vm1, %v2749_v2  ;;  %5295 = vmatprep.mubr.msk.f32.mxu0 %vm297_vm1, %v2751_v9 }
  0xec   : > { %v6180_v13 = vpop.f32.mrf.mxu0  ;;  %v6182_v14 = vpop.f32.mrf.mxu1 }
  0xee   : > { %v6185_v16 = vpop.f32.mrf.mxu0  ;;  %v6187_v17 = vpop.f32.mrf.mxu1  ;;  %5240 = vmatmul.mubr.msk.f32.gmra.mxu1 %vm297_vm1, %v2750_v6  ;;  %5296 = vmatmul.mubr.msk.f32.gmra.mxu0 %vm297_vm1, %v2752_v12  ;;  %v2762_v6 = vld [vmem:[%s5542_s25 + $0x11c] sm:$0xff] }
  0xef   : > { %5242 = vmatprep.mubr.msk.f32.mxu1 %vm297_vm1, %v2751_v9  ;;  %5298 = vmatprep.mubr.msk.f32.mxu0 %vm297_vm1, %v2753_v15 }
  0xf0   : > { %v6194_v19 = vpop.f32.mrf.mxu0  ;;  %v6196_v20 = vpop.f32.mrf.mxu1 }
  0xf2   : > { %v6199_v22 = vpop.f32.mrf.mxu0  ;;  %v6201_v23 = vpop.f32.mrf.mxu1  ;;  %5243 = vmatmul.mubr.msk.f32.gmra.mxu1 %vm297_vm1, %v2752_v12  ;;  %5299 = vmatmul.mubr.msk.f32.gmra.mxu0 %vm297_vm1, %v2754_v18 }
  0xf3   : > { %5245 = vmatprep.mubr.msk.f32.mxu1 %vm297_vm1, %v2753_v15  ;;  %5301 = vmatprep.mubr.msk.f32.mxu0 %vm297_vm1, %v2755_v21 }
  0xf4   : > { %v6208_v25 = vpop.f32.mrf.mxu0  ;;  %v6210_v26 = vpop.f32.mrf.mxu1 }
  0xf6   : > { %v4987_v28 = vpop.f32.mrf.mxu1  ;;  %v5043_v29 = vpop.f32.mrf.mxu0  ;;  %5246 = vmatmul.mubr.msk.f32.gmra.mxu1 %vm297_vm1, %v2754_v18  ;;  %5302 = vmatmul.mubr.msk.f32.gmra.mxu0 %vm297_vm1, %v2756_v24 }
  0xf7   : > { %v838_v30 = vadd.f32 %v4987_v28, %v6087_v38  ;;  %5248 = vmatprep.mubr.msk.f32.mxu1 %vm297_vm1, %v2755_v21  ;;  %5304 = vmatprep.mubr.msk.f32.mxu0 %vm297_vm1, %v2757_v27  ;;  %v2764_v28 = vld [vmem:[%s5542_s25 + $0x12c] sm:$0xff] }
  0xf8   : > { %v832_v32 = vpop.f32.mrf.mxu1  ;;  %v1226_v33 = vpop.f32.mrf.mxu0 }
  0xf9   : > { %v6220_v35 = vadd.f32 %v5043_v29, %v838_v30  ;;  %v833_v36 = vadd.f32 %v832_v32, %v6096_v41  ;;  %v2761_v41 = vld [vmem:[%s5542_s25 + $0x114] sm:$0xff] }
  0xfa   : > { %v4990_v37 = vpop.f32.mrf.mxu1  ;;  %v5046_v40 = vpop.f32.mrf.mxu0  ;;  %5249 = vmatmul.mubr.msk.f32.gmra.mxu1 %vm297_vm1, %v2756_v24  ;;  %5305 = vmatmul.mubr.msk.f32.gmra.mxu0 %vm297_vm1, %v2758_v31 }
  0xfb   : > { %v6225_v38 = vadd.f32 %v1226_v33, %v833_v36  ;;  %v848_v43 = vadd.f32 %v4990_v37, %v6101_v44  ;;  %5251 = vmatprep.mubr.msk.f32.mxu1 %vm297_vm1, %v2757_v27  ;;  %5307 = vmatprep.mubr.msk.f32.mxu0 %vm297_vm1, %v2759_v34  ;;  %v2766_v37 = vld [vmem:[%s5542_s25 + $0x13c] sm:$0xff] }
  0xfc   : > { %v842_v55 = vpop.f32.mrf.mxu1  ;;  %v1236_v61 = vpop.f32.mrf.mxu0 }
  0xfd   : > { %v6232_v46 = vadd.f32 %v5046_v40, %v848_v43  ;;  %v843_v47 = vadd.f32 %v842_v55, %v6110_v51  ;;  %v2763_v51 = vld [vmem:[%s5542_s25 + $0x124] sm:$0xff] }
  0xfe   : > { %v4993_v54 = vpop.f32.mrf.mxu1  ;;  %v5049_v60 = vpop.f32.mrf.mxu0  ;;  %5252 = vmatmul.mubr.msk.f32.gmra.mxu1 %vm297_vm1, %v2758_v31  ;;  %5308 = vmatmul.mubr.msk.f32.gmra.mxu0 %vm297_vm1, %v2760_v49 }
  0xff   : > { %v6237_v44 = vadd.f32 %v1236_v61, %v843_v47  ;;  %v858_v2 = vadd.f32 %v4993_v54, %v6115_v57  ;;  %5254 = vmatprep.mubr.msk.f32.mxu1 %vm297_vm1, %v2759_v34  ;;  %5310 = vmatprep.mubr.msk.f32.mxu0 %vm297_vm1, %v2761_v41 }
 0x100   : > { %v852_v9 = vpop.f32.mrf.mxu1  ;;  %v1246_v12 = vpop.f32.mrf.mxu0 }
 0x101   : > { %v6244_v15 = vadd.f32 %v5049_v60, %v858_v2  ;;  %v853_v18 = vadd.f32 %v852_v9, %v6124_v63  ;;  %v2765_v63 = vld [vmem:[%s5542_s25 + $0x134] sm:$0xff] }
 0x102   : > { %v4996_v21 = vpop.f32.mrf.mxu1  ;;  %v5052_v24 = vpop.f32.mrf.mxu0  ;;  %5255 = vmatmul.mubr.msk.f32.gmra.mxu1 %vm297_vm1, %v2760_v49  ;;  %5311 = vmatmul.mubr.msk.f32.gmra.mxu0 %vm297_vm1, %v2762_v6  ;;  %v3591_v49 = vld [vmem:[%s5542_s25 + $0x26] sm:$0xff]  ;;  %v3592_v2 = vld [vmem:[%s5542_s25 + $0x2e] sm:$0xff] }
 0x103   : > { %v6249_v57 = vadd.f32 %v1246_v12, %v853_v18  ;;  %v868_v27 = vadd.f32 %v4996_v21, %v6129_v50  ;;  %5257 = vmatprep.mubr.msk.f32.mxu1 %vm297_vm1, %v2761_v41  ;;  %5313 = vmatprep.mubr.msk.f32.mxu0 %vm297_vm1, %v2763_v51  ;;  %v3162_v60 = vld [vmem:[%s5542_s25 + $0x2d] sm:$0xff]  ;;  %v3163_v9 = vld [vmem:[%s5542_s25 + $0x35] sm:$0xff] }
 0x104   : > { %v862_v29 = vpop.f32.mrf.mxu1  ;;  %v1256_v30 = vpop.f32.mrf.mxu0  ;;  %v3593_v12 = vld [vmem:[%s5542_s25 + $0x36] sm:$0xff] }
 0x105   : > { %v6256_v31 = vadd.f32 %v5052_v24, %v868_v27  ;;  %v863_v32 = vadd.f32 %v862_v29, %v6138_v48  ;;  %v3161_v48 = vld [vmem:[%s5542_s25 + $0x25] sm:$0xff] }
 0x106   : > { %v4999_v33 = vpop.f32.mrf.mxu1  ;;  %v5055_v34 = vpop.f32.mrf.mxu0  ;;  %5258 = vmatmul.mubr.msk.f32.gmra.mxu1 %vm297_vm1, %v2762_v6  ;;  %5314 = vmatmul.mubr.msk.f32.gmra.mxu0 %vm297_vm1, %v2764_v28  ;;  %v3594_v29 = vld [vmem:[%s5542_s25 + $0x3e] sm:$0xff] }
 0x107   : > { %v6261_v50 = vadd.f32 %v1256_v30, %v863_v32  ;;  %v878_v36 = vadd.f32 %v4999_v33, %v6143_v56  ;;  %5260 = vmatprep.mubr.msk.f32.mxu1 %vm297_vm1, %v2763_v51  ;;  %5316 = vmatprep.mubr.msk.f32.mxu0 %vm297_vm1, %v2765_v63  ;;  %v3165_v63 = vld [vmem:[%s5542_s25 + $0x45] sm:$0xff] }
 0x108   : > { %v872_v40 = vpop.f32.mrf.mxu1  ;;  %v1266_v43 = vpop.f32.mrf.mxu0  ;;  %v3595_v32 = vld [vmem:[%s5542_s25 + $0x46] sm:$0xff] }
 0x109   : > { %v6269_v55 = vadd.f32 %v5055_v34, %v878_v36  ;;  %v873_v61 = vadd.f32 %v872_v40, %v6152_v62 }
 0x10a   : > { %v5002_v41 = vpop.f32.mrf.mxu1  ;;  %v5058_v47 = vpop.f32.mrf.mxu0  ;;  %5261 = vmatmul.mubr.msk.f32.gmra.mxu1 %vm297_vm1, %v2764_v28  ;;  %5317 = vmatmul.mubr.msk.f32.gmra.mxu0 %vm297_vm1, %v2766_v37  ;;  %v3164_v28 = vld [vmem:[%s5542_s25 + $0x3d] sm:$0xff] }
 0x10b   : > { %v6274_v56 = vadd.f32 %v1266_v43, %v873_v61  ;;  %v888_v54 = vadd.f32 %v5002_v41, %v6157_v4  ;;  %5321 = vmatprep.mubr.msk.f32.mxu1 %vm297_vm1, %v3161_v48  ;;  %5377 = vmatprep.mubr.msk.f32.mxu0 %vm297_vm1, %v3591_v49  ;;  %v3166_v43 = vld [vmem:[%s5542_s25 + $0x4d] sm:$0xff]  ;;  %v3167_v61 = vld [vmem:[%s5542_s25 + $0x55] sm:$0xff] }
 0x10c   : > { %v882_v6 = vpop.f32.mrf.mxu1  ;;  %v1276_v62 = vpop.f32.mrf.mxu0  ;;  %v3596_v48 = vld [vmem:[%s5542_s25 + $0x4e] sm:$0xff]  ;;  %v3597_v41 = vld [vmem:[%s5542_s25 + $0x56] sm:$0xff] }
 0x10d   : > { %v6283_v51 = vadd.f32 %v5058_v47, %v888_v54  ;;  %v883_v18 = vadd.f32 %v882_v6, %v6166_v7 }
 0x10e   : > { %v5005_v21 = vpop.f32.mrf.mxu1  ;;  %v5061_v4 = vpop.f32.mrf.mxu0  ;;  %5322 = vmatmul.mubr.msk.f32.vlgmr.msra.gmra.mxu1 %vm297_vm1, %v3162_v60  ;;  %5378 = vmatmul.mubr.msk.f32.vlgmr.msra.gmra.mxu0 %vm297_vm1, %v3592_v2 }
 0x10f   : > { %v6288_v24 = vadd.f32 %v1276_v62, %v883_v18  ;;  %v898_v27 = vadd.f32 %v5005_v21, %v6171_v10  ;;  %5324 = vmatprep.mubr.msk.f32.mxu1 %vm297_vm1, %v3163_v9  ;;  %5380 = vmatprep.mubr.msk.f32.mxu0 %vm297_vm1, %v3593_v12  ;;  %v3168_v62 = vld [vmem:[%s5542_s25 + $0x5d] sm:$0xff]  ;;  %v3169_v18 = vld [vmem:[%s5542_s25 + $0x65] sm:$0xff] }
 0x110   : > { %v892_v30 = vpop.f32.mrf.mxu1  ;;  %v1286_v7 = vpop.f32.mrf.mxu0  ;;  %v3598_v9 = vld [vmem:[%s5542_s25 + $0x5e] sm:$0xff]  ;;  %v3599_v21 = vld [vmem:[%s5542_s25 + $0x66] sm:$0xff] }
 0x111   : > { %v6297_v33 = vadd.f32 %v5061_v4, %v898_v27  ;;  %v893_v34 = vadd.f32 %v892_v30, %v6180_v13 }
 0x112   : > { %v5008_v36 = vpop.f32.mrf.mxu1  ;;  %v5064_v10 = vpop.f32.mrf.mxu0  ;;  %5325 = vmatmul.mubr.msk.f32.gmra.mxu1 %vm297_vm1, %v3164_v28  ;;  %5381 = vmatmul.mubr.msk.f32.gmra.mxu0 %vm297_vm1, %v3594_v29 }
 0x113   : > { %v6302_v37 = vadd.f32 %v1286_v7, %v893_v34  ;;  %v908_v40 = vadd.f32 %v5008_v36, %v6185_v16  ;;  %5327 = vmatprep.mubr.msk.f32.mxu1 %vm297_vm1, %v3165_v63  ;;  %5383 = vmatprep.mubr.msk.f32.mxu0 %vm297_vm1, %v3595_v32  ;;  %v3170_v7 = vld [vmem:[%s5542_s25 + $0x6d] sm:$0xff]  ;;  %v3171_v34 = vld [vmem:[%s5542_s25 + $0x75] sm:$0xff] }
 0x114   : > { %v902_v49 = vpop.f32.mrf.mxu1  ;;  %v1296_v13 = vpop.f32.mrf.mxu0  ;;  %v3600_v63 = vld [vmem:[%s5542_s25 + $0x6e] sm:$0xff]  ;;  %v3601_v36 = vld [vmem:[%s5542_s25 + $0x76] sm:$0xff] }
 0x115   : > { %v6311_v47 = vadd.f32 %v5064_v10, %v908_v40  ;;  %v903_v54 = vadd.f32 %v902_v49, %v6194_v19 }
 0x116   : > { %v5011_v60 = vpop.f32.mrf.mxu1  ;;  %v5067_v16 = vpop.f32.mrf.mxu0  ;;  %5328 = vmatmul.mubr.msk.f32.gmra.mxu1 %vm297_vm1, %v3166_v43  ;;  %5384 = vmatmul.mubr.msk.f32.gmra.mxu0 %vm297_vm1, %v3596_v48 }
 0x117   : > { %v6316_v2 = vadd.f32 %v1296_v13, %v903_v54  ;;  %v918_v6 = vadd.f32 %v5011_v60, %v6199_v22  ;;  %5330 = vmatprep.mubr.msk.f32.mxu1 %vm297_vm1, %v3167_v61  ;;  %5386 = vmatprep.mubr.msk.f32.mxu0 %vm297_vm1, %v3597_v41  ;;  %v3172_v13 = vld [vmem:[%s5542_s25 + $0x7d] sm:$0xff]  ;;  %v3173_v54 = vld [vmem:[%s5542_s25 + $0x85] sm:$0xff] }
 0x118   : > { %v912_v12 = vpop.f32.mrf.mxu1  ;;  %v1306_v19 = vpop.f32.mrf.mxu0  ;;  %v3602_v61 = vld [vmem:[%s5542_s25 + $0x7e] sm:$0xff]  ;;  %v3603_v60 = vld [vmem:[%s5542_s25 + $0x86] sm:$0xff] }
 0x119   : > { %v6325_v4 = vadd.f32 %v5067_v16, %v918_v6  ;;  %v913_v27 = vadd.f32 %v912_v12, %v6208_v25 }
 0x11a   : > { %v5014_v28 = vpop.f32.mrf.mxu1  ;;  %v5070_v22 = vpop.f32.mrf.mxu0  ;;  %5331 = vmatmul.mubr.msk.f32.gmra.mxu1 %vm297_vm1, %v3168_v62  ;;  %5387 = vmatmul.mubr.msk.f32.gmra.mxu0 %vm297_vm1, %v3598_v9 }
 0x11b   : > { %v6330_v29 = vadd.f32 %v1306_v19, %v913_v27  ;;  %v928_v30 = vadd.f32 %v5014_v28, %v6089_v39  ;;  %5333 = vmatprep.mubr.msk.f32.mxu1 %vm297_vm1, %v3169_v18  ;;  %5389 = vmatprep.mubr.msk.f32.mxu0 %vm297_vm1, %v3599_v21  ;;  %v3174_v19 = vld [vmem:[%s5542_s25 + $0x8d] sm:$0xff]  ;;  %v3175_v27 = vld [vmem:[%s5542_s25 + $0x95] sm:$0xff] }
 0x11c   : > { %v922_v32 = vpop.f32.mrf.mxu1  ;;  %v1316_v25 = vpop.f32.mrf.mxu0  ;;  %v3604_v18 = vld [vmem:[%s5542_s25 + $0x8e] sm:$0xff]  ;;  %v3605_v28 = vld [vmem:[%s5542_s25 + $0x96] sm:$0xff] }
 0x11d   : > { %v6339_v10 = vadd.f32 %v5070_v22, %v928_v30  ;;  %v923_v40 = vadd.f32 %v922_v32, %v6098_v42 }
 0x11e   : > { %v5017_v43 = vpop.f32.mrf.mxu1  ;;  %v5073_v39 = vpop.f32.mrf.mxu0  ;;  %5334 = vmatmul.mubr.msk.f32.gmra.mxu1 %vm297_vm1, %v3170_v7  ;;  %5390 = vmatmul.mubr.msk.f32.gmra.mxu0 %vm297_vm1, %v3600_v63 }
 0x11f   : > { %v6344_v48 = vadd.f32 %v1316_v25, %v923_v40  ;;  %v938_v49 = vadd.f32 %v5017_v43, %v6103_v45  ;;  %5336 = vmatprep.mubr.msk.f32.mxu1 %vm297_vm1, %v3171_v34  ;;  %5392 = vmatprep.mubr.msk.f32.mxu0 %vm297_vm1, %v3601_v36  ;;  %v3176_v25 = vld [vmem:[%s5542_s25 + $0x9d] sm:$0xff]  ;;  %v3177_v40 = vld [vmem:[%s5542_s25 + $0xa5] sm:$0xff] }
 0x120   : > { %v932_v41 = vpop.f32.mrf.mxu1  ;;  %v1326_v42 = vpop.f32.mrf.mxu0  ;;  %v3606_v34 = vld [vmem:[%s5542_s25 + $0x9e] sm:$0xff]  ;;  %v3607_v43 = vld [vmem:[%s5542_s25 + $0xa6] sm:$0xff] }
 0x121   : > { %v6353_v16 = vadd.f32 %v5073_v39, %v938_v49  ;;  %v933_v6 = vadd.f32 %v932_v41, %v6112_v53 }
 0x122   : > { %v5020_v62 = vpop.f32.mrf.mxu1  ;;  %v5076_v45 = vpop.f32.mrf.mxu0  ;;  %5337 = vmatmul.mubr.msk.f32.gmra.mxu1 %vm297_vm1, %v3172_v13  ;;  %5393 = vmatmul.mubr.msk.f32.gmra.mxu0 %vm297_vm1, %v3602_v61 }
 0x123   : > { %v6358_v9 = vadd.f32 %v1326_v42, %v933_v6  ;;  %v948_v12 = vadd.f32 %v5020_v62, %v6117_v59  ;;  %5339 = vmatprep.mubr.msk.f32.mxu1 %vm297_vm1, %v3173_v54  ;;  %5395 = vmatprep.mubr.msk.f32.mxu0 %vm297_vm1, %v3603_v60  ;;  %v3178_v42 = vld [vmem:[%s5542_s25 + $0xad] sm:$0xff]  ;;  %v3179_v6 = vld [vmem:[%s5542_s25 + $0xb5] sm:$0xff] }
 0x124   : > { %v942_v21 = vpop.f32.mrf.mxu1  ;;  %v1336_v53 = vpop.f32.mrf.mxu0  ;;  %v3608_v54 = vld [vmem:[%s5542_s25 + $0xae] sm:$0xff]  ;;  %v3609_v62 = vld [vmem:[%s5542_s25 + $0xb6] sm:$0xff] }
 0x125   : > { %v6367_v22 = vadd.f32 %v5076_v45, %v948_v12  ;;  %v943_v30 = vadd.f32 %v942_v21, %v6126_v1 }
 0x126   : > { %v5023_v7 = vpop.f32.mrf.mxu1  ;;  %v5079_v59 = vpop.f32.mrf.mxu0  ;;  %5340 = vmatmul.mubr.msk.f32.gmra.mxu1 %vm297_vm1, %v3174_v19  ;;  %5396 = vmatmul.mubr.msk.f32.gmra.mxu0 %vm297_vm1, %v3604_v18 }
 0x127   : > { %v6372_v63 = vadd.f32 %v1336_v53, %v943_v30  ;;  %v958_v32 = vadd.f32 %v5023_v7, %v6131_v3  ;;  %5342 = vmatprep.mubr.msk.f32.mxu1 %vm297_vm1, %v3175_v27  ;;  %5398 = vmatprep.mubr.msk.f32.mxu0 %vm297_vm1, %v3605_v28  ;;  %v3180_v53 = vld [vmem:[%s5542_s25 + $0xbd] sm:$0xff]  ;;  %v3181_v30 = vld [vmem:[%s5542_s25 + $0xc5] sm:$0xff] }
 0x128   : > { %v952_v36 = vpop.f32.mrf.mxu1  ;;  %v1346_v1 = vpop.f32.mrf.mxu0  ;;  %v3610_v27 = vld [vmem:[%s5542_s25 + $0xbe] sm:$0xff]  ;;  %v3611_v7 = vld [vmem:[%s5542_s25 + $0xc6] sm:$0xff] }
 0x129   : > { %v6381_v39 = vadd.f32 %v5079_v59, %v958_v32  ;;  %v953_v49 = vadd.f32 %v952_v36, %v6140_v52 }
 0x12a   : > { %v5026_v13 = vpop.f32.mrf.mxu1  ;;  %v5082_v3 = vpop.f32.mrf.mxu0  ;;  %5343 = vmatmul.mubr.msk.f32.gmra.mxu1 %vm297_vm1, %v3176_v25  ;;  %5399 = vmatmul.mubr.msk.f32.gmra.mxu0 %vm297_vm1, %v3606_v34 }
 0x12b   : > { %v6386_v61 = vadd.f32 %v1346_v1, %v953_v49  ;;  %v968_v41 = vadd.f32 %v5026_v13, %v6145_v58  ;;  %5345 = vmatprep.mubr.msk.f32.mxu1 %vm297_vm1, %v3177_v40  ;;  %5401 = vmatprep.mubr.msk.f32.mxu0 %vm297_vm1, %v3607_v43  ;;  %v3182_v1 = vld [vmem:[%s5542_s25 + $0xcd] sm:$0xff]  ;;  %v3183_v49 = vld [vmem:[%s5542_s25 + $0xd5] sm:$0xff] }
 0x12c   : > { %v962_v60 = vpop.f32.mrf.mxu1  ;;  %v1356_v52 = vpop.f32.mrf.mxu0  ;;  %v3612_v40 = vld [vmem:[%s5542_s25 + $0xce] sm:$0xff]  ;;  %v3613_v13 = vld [vmem:[%s5542_s25 + $0xd6] sm:$0xff] }
 0x12d   : > { %v6395_v45 = vadd.f32 %v5082_v3, %v968_v41  ;;  %v963_v12 = vadd.f32 %v962_v60, %v6154_v0 }
 0x12e   : > { %v5029_v19 = vpop.f32.mrf.mxu1  ;;  %v5085_v58 = vpop.f32.mrf.mxu0  ;;  %5346 = vmatmul.mubr.msk.f32.gmra.mxu1 %vm297_vm1, %v3178_v42  ;;  %5402 = vmatmul.mubr.msk.f32.gmra.mxu0 %vm297_vm1, %v3608_v54 }
 0x12f   : > { %v6400_v18 = vadd.f32 %v1356_v52, %v963_v12  ;;  %v978_v21 = vadd.f32 %v5029_v19, %v6159_v5  ;;  %5348 = vmatprep.mubr.msk.f32.mxu1 %vm297_vm1, %v3179_v6  ;;  %5404 = vmatprep.mubr.msk.f32.mxu0 %vm297_vm1, %v3609_v62  ;;  %v3184_v52 = vld [vmem:[%s5542_s25 + $0xdd] sm:$0xff]  ;;  %v3185_v12 = vld [vmem:[%s5542_s25 + $0xe5] sm:$0xff] }
 0x130   : > { %v972_v28 = vpop.f32.mrf.mxu1  ;;  %v1366_v0 = vpop.f32.mrf.mxu0  ;;  %v3614_v6 = vld [vmem:[%s5542_s25 + $0xde] sm:$0xff]  ;;  %v3615_v19 = vld [vmem:[%s5542_s25 + $0xe6] sm:$0xff] }
 0x131   : > { %v6409_v59 = vadd.f32 %v5085_v58, %v978_v21  ;;  %v973_v32 = vadd.f32 %v972_v28, %v6168_v8 }
 0x132   : > { %v5032_v25 = vpop.f32.mrf.mxu1  ;;  %v5088_v5 = vpop.f32.mrf.mxu0  ;;  %5349 = vmatmul.mubr.msk.f32.gmra.mxu1 %vm297_vm1, %v3180_v53  ;;  %5405 = vmatmul.mubr.msk.f32.gmra.mxu0 %vm297_vm1, %v3610_v27 }
 0x133   : > { %v6414_v34 = vadd.f32 %v1366_v0, %v973_v32  ;;  %v988_v36 = vadd.f32 %v5032_v25, %v6173_v11  ;;  %5351 = vmatprep.mubr.msk.f32.mxu1 %vm297_vm1, %v3181_v30  ;;  %5407 = vmatprep.mubr.msk.f32.mxu0 %vm297_vm1, %v3611_v7  ;;  %v3186_v0 = vld [vmem:[%s5542_s25 + $0xed] sm:$0xff]  ;;  %v3187_v32 = vld [vmem:[%s5542_s25 + $0xf5] sm:$0xff] }
 0x134   : > { %v982_v43 = vpop.f32.mrf.mxu1  ;;  %v1376_v8 = vpop.f32.mrf.mxu0  ;;  %v3616_v30 = vld [vmem:[%s5542_s25 + $0xee] sm:$0xff]  ;;  %v3617_v25 = vld [vmem:[%s5542_s25 + $0xf6] sm:$0xff] }
 0x135   : > { %v6423_v3 = vadd.f32 %v5088_v5, %v988_v36  ;;  %v983_v41 = vadd.f32 %v982_v43, %v6182_v14 }
 0x136   : > { %v5035_v42 = vpop.f32.mrf.mxu1  ;;  %v5091_v11 = vpop.f32.mrf.mxu0  ;;  %5352 = vmatmul.mubr.msk.f32.gmra.mxu1 %vm297_vm1, %v3182_v1  ;;  %5408 = vmatmul.mubr.msk.f32.gmra.mxu0 %vm297_vm1, %v3612_v40 }
 0x137   : > { %v6428_v54 = vadd.f32 %v1376_v8, %v983_v41  ;;  %v998_v60 = vadd.f32 %v5035_v42, %v6187_v17  ;;  %5354 = vmatprep.mubr.msk.f32.mxu1 %vm297_vm1, %v3183_v49  ;;  %5410 = vmatprep.mubr.msk.f32.mxu0 %vm297_vm1, %v3613_v13  ;;  %v3188_v8 = vld [vmem:[%s5542_s25 + $0xfd] sm:$0xff]  ;;  %v3189_v41 = vld [vmem:[%s5542_s25 + $0x105] sm:$0xff] }
 0x138   : > { %v992_v62 = vpop.f32.mrf.mxu1  ;;  %v1386_v14 = vpop.f32.mrf.mxu0  ;;  %v3618_v49 = vld [vmem:[%s5542_s25 + $0xfe] sm:$0xff]  ;;  %v3619_v42 = vld [vmem:[%s5542_s25 + $0x106] sm:$0xff] }
 0x139   : > { %v6437_v58 = vadd.f32 %v5091_v11, %v998_v60  ;;  %v993_v21 = vadd.f32 %v992_v62, %v6196_v20 }
 0x13a   : > { %v5038_v53 = vpop.f32.mrf.mxu1  ;;  %v5094_v17 = vpop.f32.mrf.mxu0  ;;  %5355 = vmatmul.mubr.msk.f32.gmra.mxu1 %vm297_vm1, %v3184_v52  ;;  %5411 = vmatmul.mubr.msk.f32.gmra.mxu0 %vm297_vm1, %v3614_v6 }
 0x13b   : > { %v6442_v27 = vadd.f32 %v1386_v14, %v993_v21  ;;  %v1008_v28 = vadd.f32 %v5038_v53, %v6201_v23  ;;  %5357 = vmatprep.mubr.msk.f32.mxu1 %vm297_vm1, %v3185_v12  ;;  %5413 = vmatprep.mubr.msk.f32.mxu0 %vm297_vm1, %v3615_v19  ;;  %v3190_v14 = vld [vmem:[%s5542_s25 + $0x10d] sm:$0xff]  ;;  %v3191_v21 = vld [vmem:[%s5542_s25 + $0x115] sm:$0xff] }
 0x13c   : > { %v1002_v7 = vpop.f32.mrf.mxu1  ;;  %v1396_v20 = vpop.f32.mrf.mxu0  ;;  %v3620_v12 = vld [vmem:[%s5542_s25 + $0x10e] sm:$0xff]  ;;  %v3621_v53 = vld [vmem:[%s5542_s25 + $0x116] sm:$0xff] }
 0x13d   : > { %v6451_v5 = vadd.f32 %v5094_v17, %v1008_v28  ;;  %v1003_v36 = vadd.f32 %v1002_v7, %v6210_v26 }
 0x13e   : > { %v5099_v1 = vpop.f32.mrf.mxu1  ;;  %v5155_v23 = vpop.f32.mrf.mxu0  ;;  %5358 = vmatmul.mubr.msk.f32.gmra.mxu1 %vm297_vm1, %v3186_v0  ;;  %5414 = vmatmul.mubr.msk.f32.gmra.mxu0 %vm297_vm1, %v3616_v30 }
 0x13f   : > { %v6456_v40 = vadd.f32 %v1396_v20, %v1003_v36  ;;  %v1836_v43 = vadd.f32 %v5099_v1, %v6220_v35  ;;  %5360 = vmatprep.mubr.msk.f32.mxu1 %vm297_vm1, %v3187_v32  ;;  %5416 = vmatprep.mubr.msk.f32.mxu0 %vm297_vm1, %v3617_v25  ;;  %v3192_v20 = vld [vmem:[%s5542_s25 + $0x11d] sm:$0xff]  ;;  %v3193_v36 = vld [vmem:[%s5542_s25 + $0x125] sm:$0xff] }
 0x140   : > { %v1656_v13 = vpop.f32.mrf.mxu1  ;;  %v2086_v26 = vpop.f32.mrf.mxu0  ;;  %v3622_v32 = vld [vmem:[%s5542_s25 + $0x11e] sm:$0xff]  ;;  %v3623_v1 = vld [vmem:[%s5542_s25 + $0x126] sm:$0xff] }
 0x141   : > { %v6465_v11 = vadd.f32 %v5155_v23, %v1836_v43  ;;  %v1835_v60 = vadd.f32 %v1656_v13, %v6225_v38 }
 0x142   : > { %v5102_v52 = vpop.f32.mrf.mxu1  ;;  %v5158_v35 = vpop.f32.mrf.mxu0  ;;  %5361 = vmatmul.mubr.msk.f32.gmra.mxu1 %vm297_vm1, %v3188_v8  ;;  %5417 = vmatmul.mubr.msk.f32.gmra.mxu0 %vm297_vm1, %v3618_v49 }
 0x143   : > { %v6470_v6 = vadd.f32 %v2086_v26, %v1835_v60  ;;  %v1838_v62 = vadd.f32 %v5102_v52, %v6232_v46  ;;  %5363 = vmatprep.mubr.msk.f32.mxu1 %vm297_vm1, %v3189_v41  ;;  %5419 = vmatprep.mubr.msk.f32.mxu0 %vm297_vm1, %v3619_v42  ;;  %v3194_v26 = vld [vmem:[%s5542_s25 + $0x12d] sm:$0xff]  ;;  %v3195_v60 = vld [vmem:[%s5542_s25 + $0x135] sm:$0xff] }
 0x144   : > { %v1666_v19 = vpop.f32.mrf.mxu1  ;;  %v2096_v38 = vpop.f32.mrf.mxu0  ;;  %v3624_v41 = vld [vmem:[%s5542_s25 + $0x12e] sm:$0xff]  ;;  %v3625_v52 = vld [vmem:[%s5542_s25 + $0x136] sm:$0xff] }
 0x145   : > { %v6479_v17 = vadd.f32 %v5158_v35, %v1838_v62  ;;  %v1837_v28 = vadd.f32 %v1666_v19, %v6237_v44 }
 0x146   : > { %v5105_v0 = vpop.f32.mrf.mxu1  ;;  %v5161_v46 = vpop.f32.mrf.mxu0  ;;  %5364 = vmatmul.mubr.msk.f32.gmra.mxu1 %vm297_vm1, %v3190_v14  ;;  %5420 = vmatmul.mubr.msk.f32.gmra.mxu0 %vm297_vm1, %v3620_v12 }
 0x147   : > { %v6484_v30 = vadd.f32 %v2096_v38, %v1837_v28  ;;  %v1840_v7 = vadd.f32 %v5105_v0, %v6244_v15  ;;  %5366 = vmatprep.mubr.msk.f32.mxu1 %vm297_vm1, %v3191_v21  ;;  %5422 = vmatprep.mubr.msk.f32.mxu0 %vm297_vm1, %v3621_v53  ;;  %v3196_v38 = vld [vmem:[%s5542_s25 + $0x13d] sm:$0xff] }
 0x148   : > { %v1676_v25 = vpop.f32.mrf.mxu1  ;;  %v2106_v44 = vpop.f32.mrf.mxu0  ;;  %v3626_v21 = vld [vmem:[%s5542_s25 + $0x13e] sm:$0xff] }
 0x149   : > { %v6493_v23 = vadd.f32 %v5161_v46, %v1840_v7  ;;  %v1839_v43 = vadd.f32 %v1676_v25, %v6249_v57 }
 0x14a   : > { %v5108_v8 = vpop.f32.mrf.mxu1  ;;  %v5164_v15 = vpop.f32.mrf.mxu0  ;;  %5367 = vmatmul.mubr.msk.f32.gmra.mxu1 %vm297_vm1, %v3192_v20  ;;  %5423 = vmatmul.mubr.msk.f32.gmra.mxu0 %vm297_vm1, %v3622_v32 }
 0x14b   : > { %v6498_v49 = vadd.f32 %v2106_v44, %v1839_v43  ;;  %v1842_v13 = vadd.f32 %v5108_v8, %v6256_v31  ;;  %5369 = vmatprep.mubr.msk.f32.mxu1 %vm297_vm1, %v3193_v36  ;;  %5425 = vmatprep.mubr.msk.f32.mxu0 %vm297_vm1, %v3623_v1 }
 0x14c   : > { %v1686_v42 = vpop.f32.mrf.mxu1  ;;  %v2116_v57 = vpop.f32.mrf.mxu0 }
 0x14d   : > { %v6507_v35 = vadd.f32 %v5164_v15, %v1842_v13  ;;  %v1841_v62 = vadd.f32 %v1686_v42, %v6261_v50 }
 0x14e   : > { %v5111_v14 = vpop.f32.mrf.mxu1  ;;  %v5167_v12 = vpop.f32.mrf.mxu0  ;;  %5370 = vmatmul.mubr.msk.f32.gmra.mxu1 %vm297_vm1, %v3194_v26  ;;  %5426 = vmatmul.mubr.msk.f32.gmra.mxu0 %vm297_vm1, %v3624_v41 }
 0x14f   : > { %v6512_v31 = vadd.f32 %v2116_v57, %v1841_v62  ;;  %v1844_v19 = vadd.f32 %v5111_v14, %v6269_v55  ;;  %5372 = vmatprep.mubr.msk.f32.mxu1 %vm297_vm1, %v3195_v60  ;;  %5428 = vmatprep.mubr.msk.f32.mxu0 %vm297_vm1, %v3625_v52 }
 0x150   : > { %v1696_v53 = vpop.f32.mrf.mxu1  ;;  %v2126_v28 = vpop.f32.mrf.mxu0 }
 0x151   : > { %v6519_v0 = vadd.f32 %v5167_v12, %v1844_v19  ;;  %v1843_v50 = vadd.f32 %v1696_v53, %v6274_v56 }
 0x152   : > { %v5114_v46 = vpop.f32.mrf.mxu1  ;;  %v5170_v7 = vpop.f32.mrf.mxu0  ;;  %5373 = vmatmul.mubr.msk.f32.gmra.mxu1 %vm297_vm1, %v3196_v38  ;;  %5429 = vmatmul.mubr.msk.f32.gmra.mxu0 %vm297_vm1, %v3626_v21 }
 0x153   : > { %v6524_v20 = vadd.f32 %v2126_v28, %v1843_v50  ;;  %v1846_v55 = vadd.f32 %v5114_v46, %v6283_v51 }
 0x154   : > { %v1706_v32 = vpop.f32.mrf.mxu1  ;;  %v2136_v25 = vpop.f32.mrf.mxu0 }
 0x155   : > { %v6527_v44 = vadd.f32 %v5170_v7, %v1846_v55  ;;  %v1845_v36 = vadd.f32 %v1706_v32, %v6288_v24 }
 0x156   : > { %v5117_v1 = vpop.f32.mrf.mxu1  ;;  %v5173_v43 = vpop.f32.mrf.mxu0 }
 0x157   : > { %v6530_v8 = vadd.f32 %v2136_v25, %v1845_v36  ;;  %v1848_v56 = vadd.f32 %v5117_v1, %v6297_v33 }
 0x158   : > { %v1716_v15 = vpop.f32.mrf.mxu1  ;;  %v2146_v13 = vpop.f32.mrf.mxu0 }
 0x159   : > { %v6533_v26 = vadd.f32 %v5173_v43, %v1848_v56  ;;  %v1847_v41 = vadd.f32 %v1716_v15, %v6302_v37 }
 0x15a   : > { %v5120_v42 = vpop.f32.mrf.mxu1  ;;  %v5176_v51 = vpop.f32.mrf.mxu0 }
 0x15b   : > { %v6536_v57 = vadd.f32 %v2146_v13, %v1847_v41  ;;  %v1850_v60 = vadd.f32 %v5120_v42, %v6311_v47 }
 0x15c   : > { %v1726_v52 = vpop.f32.mrf.mxu1  ;;  %v2156_v24 = vpop.f32.mrf.mxu0 }
 0x15d   : > { %v6539_v62 = vadd.f32 %v5176_v51, %v1850_v60  ;;  %v1849_v14 = vadd.f32 %v1726_v52, %v6316_v2 }
 0x15e   : > { %v5123_v12 = vpop.f32.mrf.mxu1  ;;  %v5179_v33 = vpop.f32.mrf.mxu0 }
 0x15f   : > { %v6542_v19 = vadd.f32 %v2156_v24, %v1849_v14  ;;  %v1852_v38 = vadd.f32 %v5123_v12, %v6325_v4 }
 0x160   : > { %v1736_v21 = vpop.f32.mrf.mxu1  ;;  %v2166_v37 = vpop.f32.mrf.mxu0 }
 0x161   : > { %v6545_v53 = vadd.f32 %v5179_v33, %v1852_v38  ;;  %v1851_v28 = vadd.f32 %v1736_v21, %v6330_v29 }
 0x162   : > { %v5126_v50 = vpop.f32.mrf.mxu1  ;;  %v5182_v47 = vpop.f32.mrf.mxu0 }
 0x163   : > { %v6548_v46 = vadd.f32 %v2166_v37, %v1851_v28  ;;  %v1854_v7 = vadd.f32 %v5126_v50, %v6339_v10 }
 0x164   : > { %v1746_v55 = vpop.f32.mrf.mxu1  ;;  %v2176_v2 = vpop.f32.mrf.mxu0 }
 0x165   : > { %v6551_v32 = vadd.f32 %v5182_v47, %v1854_v7  ;;  %v1853_v25 = vadd.f32 %v1746_v55, %v6344_v48 }
 0x166   : > { %v5129_v36 = vpop.f32.mrf.mxu1  ;;  %v5185_v4 = vpop.f32.mrf.mxu0 }
 0x167   : > { %v6554_v1 = vadd.f32 %v2176_v2, %v1853_v25  ;;  %v1856_v43 = vadd.f32 %v5129_v36, %v6353_v16 }
 0x168   : > { %v1756_v56 = vpop.f32.mrf.mxu1  ;;  %v2186_v29 = vpop.f32.mrf.mxu0 }
 0x169   : > { %v6557_v15 = vadd.f32 %v5185_v4, %v1856_v43  ;;  %v1855_v13 = vadd.f32 %v1756_v56, %v6358_v9 }
 0x16a   : > { %v5132_v41 = vpop.f32.mrf.mxu1  ;;  %v5188_v10 = vpop.f32.mrf.mxu0 }
 0x16b   : > { %v6560_v42 = vadd.f32 %v2186_v29, %v1855_v13  ;;  %v1858_v51 = vadd.f32 %v5132_v41, %v6367_v22 }
 0x16c   : > { %v1766_v60 = vpop.f32.mrf.mxu1  ;;  %v2196_v48 = vpop.f32.mrf.mxu0 }
 0x16d   : > { %v6563_v52 = vadd.f32 %v5188_v10, %v1858_v51  ;;  %v1857_v24 = vadd.f32 %v1766_v60, %v6372_v63 }
 0x16e   : > { %v5135_v14 = vpop.f32.mrf.mxu1  ;;  %v5191_v16 = vpop.f32.mrf.mxu0 }
 0x16f   : > { %v6566_v12 = vadd.f32 %v2196_v48, %v1857_v24  ;;  %v1860_v33 = vadd.f32 %v5135_v14, %v6381_v39 }
 0x170   : > { %v1776_v38 = vpop.f32.mrf.mxu1  ;;  %v2206_v9 = vpop.f32.mrf.mxu0 }
 0x171   : > { %v6569_v21 = vadd.f32 %v5191_v16, %v1860_v33  ;;  %v1859_v37 = vadd.f32 %v1776_v38, %v6386_v61 }
 0x172   : > { %v5138_v28 = vpop.f32.mrf.mxu1  ;;  %v5194_v22 = vpop.f32.mrf.mxu0 }
 0x173   : > { %v6572_v50 = vadd.f32 %v2206_v9, %v1859_v37  ;;  %v1862_v47 = vadd.f32 %v5138_v28, %v6395_v45 }
 0x174   : > { %v1786_v7 = vpop.f32.mrf.mxu1  ;;  %v2216_v63 = vpop.f32.mrf.mxu0 }
 0x175   : > { %v6575_v55 = vadd.f32 %v5194_v22, %v1862_v47  ;;  %v1861_v2 = vadd.f32 %v1786_v7, %v6400_v18 }
 0x176   : > { %v5141_v25 = vpop.f32.mrf.mxu1  ;;  %v5197_v39 = vpop.f32.mrf.mxu0 }
 0x177   : > { %v6578_v36 = vadd.f32 %v2216_v63, %v1861_v2  ;;  %v1864_v4 = vadd.f32 %v5141_v25, %v6409_v59 }
 0x178   : > { %v1796_v43 = vpop.f32.mrf.mxu1  ;;  %v2226_v61 = vpop.f32.mrf.mxu0 }
 0x179   : > { %v6581_v56 = vadd.f32 %v5197_v39, %v1864_v4  ;;  %v1863_v29 = vadd.f32 %v1796_v43, %v6414_v34 }
 0x17a   : > { %v5144_v13 = vpop.f32.mrf.mxu1  ;;  %v5200_v45 = vpop.f32.mrf.mxu0 }
 0x17b   : > { %v6584_v41 = vadd.f32 %v2226_v61, %v1863_v29  ;;  %v1866_v10 = vadd.f32 %v5144_v13, %v6423_v3 }
 0x17c   : > { %v1806_v51 = vpop.f32.mrf.mxu1  ;;  %v2236_v18 = vpop.f32.mrf.mxu0 }
 0x17d   : > { %v6587_v60 = vadd.f32 %v5200_v45, %v1866_v10  ;;  %v1865_v48 = vadd.f32 %v1806_v51, %v6428_v54 }
 0x17e   : > { %v5147_v24 = vpop.f32.mrf.mxu1  ;;  %v5203_v59 = vpop.f32.mrf.mxu0 }
 0x17f   : > { %v6590_v14 = vadd.f32 %v2236_v18, %v1865_v48  ;;  %v1868_v16 = vadd.f32 %v5147_v24, %v6437_v58 }
 0x180   : > { %v1816_v33 = vpop.f32.mrf.mxu1  ;;  %v2246_v34 = vpop.f32.mrf.mxu0 }
 0x181   : > { %v6593_v38 = vadd.f32 %v5203_v59, %v1868_v16  ;;  %v1867_v9 = vadd.f32 %v1816_v33, %v6442_v27 }
 0x182   : > { %v5150_v37 = vpop.f32.mrf.mxu1  ;;  %v5206_v3 = vpop.f32.mrf.mxu0 }
 0x183   : > { %v6596_v28 = vadd.f32 %v2246_v34, %v1867_v9  ;;  %v1870_v22 = vadd.f32 %v5150_v37, %v6451_v5 }
 0x184   : > { %v1826_v47 = vpop.f32.mrf.mxu1  ;;  %v2256_v54 = vpop.f32.mrf.mxu0 }
 0x185   : > { %v6599_v7 = vadd.f32 %v5206_v3, %v1870_v22  ;;  %v1869_v63 = vadd.f32 %v1826_v47, %v6456_v40 }
 0x186   : > { %v5211_v2 = vpop.f32.mrf.mxu1  ;;  %v5267_v58 = vpop.f32.mrf.mxu0 }
 0x187   : > { %v6602_v25 = vadd.f32 %v2256_v54, %v1869_v63  ;;  %v2696_v39 = vadd.f32 %v5211_v2, %v6465_v11 }
 0x188   : > { %v2516_v4 = vpop.f32.mrf.mxu1  ;;  %v2946_v27 = vpop.f32.mrf.mxu0 }
 0x189   : > { %v6605_v43 = vadd.f32 %v5267_v58, %v2696_v39  ;;  %v2695_v61 = vadd.f32 %v2516_v4, %v6470_v6 }
 0x18a   : > { %v5214_v29 = vpop.f32.mrf.mxu1  ;;  %v5270_v5 = vpop.f32.mrf.mxu0 }
 0x18b   : > { %v6608_v13 = vadd.f32 %v2946_v27, %v2695_v61  ;;  %v2698_v45 = vadd.f32 %v5214_v29, %v6479_v17 }
 0x18c   : > { %v2526_v10 = vpop.f32.mrf.mxu1  ;;  %v2956_v40 = vpop.f32.mrf.mxu0 }
 0x18d   : > { %v6611_v51 = vadd.f32 %v5270_v5, %v2698_v45  ;;  %v2697_v18 = vadd.f32 %v2526_v10, %v6484_v30 }
 0x18e   : > { %v5217_v48 = vpop.f32.mrf.mxu1  ;;  %v5273_v11 = vpop.f32.mrf.mxu0 }
 0x18f   : > { %v6614_v24 = vadd.f32 %v2956_v40, %v2697_v18  ;;  %v2700_v59 = vadd.f32 %v5217_v48, %v6493_v23 }
 0x190   : > { %v2536_v16 = vpop.f32.mrf.mxu1  ;;  %v2966_v6 = vpop.f32.mrf.mxu0 }
 0x191   : > { %v6617_v33 = vadd.f32 %v5273_v11, %v2700_v59  ;;  %v2699_v34 = vadd.f32 %v2536_v16, %v6498_v49 }
 0x192   : > { %v5220_v9 = vpop.f32.mrf.mxu1  ;;  %v5276_v17 = vpop.f32.mrf.mxu0 }
 0x193   : > { %v6620_v37 = vadd.f32 %v2966_v6, %v2699_v34  ;;  %v2702_v3 = vadd.f32 %v5220_v9, %v6507_v35 }
 0x194   : > { %v2546_v22 = vpop.f32.mrf.mxu1  ;;  %v2976_v30 = vpop.f32.mrf.mxu0 }
 0x195   : > { %v6623_v47 = vadd.f32 %v5276_v17, %v2702_v3  ;;  %v2701_v54 = vadd.f32 %v2546_v22, %v6512_v31 }
 0x196   : > { %v5223_v63 = vpop.f32.mrf.mxu1  ;;  %v5279_v23 = vpop.f32.mrf.mxu0 }
 0x197   : > { %v6626_v2 = vadd.f32 %v2976_v30, %v2701_v54  ;;  %v2704_v58 = vadd.f32 %v5223_v63, %v6519_v0 }
 0x198   : > { %v2556_v39 = vpop.f32.mrf.mxu1  ;;  %v2986_v49 = vpop.f32.mrf.mxu0 }
 0x199   : > { %v6629_v4 = vadd.f32 %v5279_v23, %v2704_v58  ;;  %v2703_v27 = vadd.f32 %v2556_v39, %v6524_v20 }
 0x19a   : > { %v5226_v61 = vpop.f32.mrf.mxu1  ;;  %v5282_v35 = vpop.f32.mrf.mxu0 }
 0x19b   : > { %v6632_v29 = vadd.f32 %v2986_v49, %v2703_v27  ;;  %v2706_v5 = vadd.f32 %v5226_v61, %v6527_v44 }
 0x19c   : > { %v2566_v45 = vpop.f32.mrf.mxu1  ;;  %v2996_v31 = vpop.f32.mrf.mxu0 }
 0x19d   : > { %v6635_v10 = vadd.f32 %v5282_v35, %v2706_v5  ;;  %v2705_v40 = vadd.f32 %v2566_v45, %v6530_v8 }
 0x19e   : > { %v5229_v18 = vpop.f32.mrf.mxu1  ;;  %v5285_v0 = vpop.f32.mrf.mxu0 }
 0x19f   : > { %v6638_v48 = vadd.f32 %v2996_v31, %v2705_v40  ;;  %v2708_v11 = vadd.f32 %v5229_v18, %v6533_v26 }
 0x1a0   : > { %v2576_v59 = vpop.f32.mrf.mxu1  ;;  %v3006_v20 = vpop.f32.mrf.mxu0 }
 0x1a1   : > { %v6641_v16 = vadd.f32 %v5285_v0, %v2708_v11  ;;  %v2707_v6 = vadd.f32 %v2576_v59, %v6536_v57 }
 0x1a2   : > { %v5232_v34 = vpop.f32.mrf.mxu1  ;;  %v5288_v44 = vpop.f32.mrf.mxu0 }
 0x1a3   : > { %v6644_v9 = vadd.f32 %v3006_v20, %v2707_v6  ;;  %v2710_v17 = vadd.f32 %v5232_v34, %v6539_v62 }
 0x1a4   : > { %v2586_v3 = vpop.f32.mrf.mxu1  ;;  %v3016_v8 = vpop.f32.mrf.mxu0 }
 0x1a5   : > { %v6647_v22 = vadd.f32 %v5288_v44, %v2710_v17  ;;  %v2709_v30 = vadd.f32 %v2586_v3, %v6542_v19 }
 0x1a6   : > { %v5235_v54 = vpop.f32.mrf.mxu1  ;;  %v5291_v26 = vpop.f32.mrf.mxu0 }
 0x1a7   : > { %v6650_v63 = vadd.f32 %v3016_v8, %v2709_v30  ;;  %v2712_v23 = vadd.f32 %v5235_v54, %v6545_v53 }
 0x1a8   : > { %v2596_v58 = vpop.f32.mrf.mxu1  ;;  %v3026_v57 = vpop.f32.mrf.mxu0 }
 0x1a9   : > { %v6653_v39 = vadd.f32 %v5291_v26, %v2712_v23  ;;  %v2711_v49 = vadd.f32 %v2596_v58, %v6548_v46 }
 0x1aa   : > { %v5238_v27 = vpop.f32.mrf.mxu1  ;;  %v5294_v62 = vpop.f32.mrf.mxu0 }
 0x1ab   : > { %v6656_v61 = vadd.f32 %v3026_v57, %v2711_v49  ;;  %v2714_v35 = vadd.f32 %v5238_v27, %v6551_v32 }
 0x1ac   : > { %v2606_v5 = vpop.f32.mrf.mxu1  ;;  %v3036_v19 = vpop.f32.mrf.mxu0 }
 0x1ad   : > { %v6659_v45 = vadd.f32 %v5294_v62, %v2714_v35  ;;  %v2713_v31 = vadd.f32 %v2606_v5, %v6554_v1 }
 0x1ae   : > { %v5241_v40 = vpop.f32.mrf.mxu1  ;;  %v5297_v53 = vpop.f32.mrf.mxu0 }
 0x1af   : > { %v6662_v18 = vadd.f32 %v3036_v19, %v2713_v31  ;;  %v2716_v0 = vadd.f32 %v5241_v40, %v6557_v15 }
 0x1b0   : > { %v2616_v11 = vpop.f32.mrf.mxu1  ;;  %v3046_v46 = vpop.f32.mrf.mxu0 }
 0x1b1   : > { %v6665_v59 = vadd.f32 %v5297_v53, %v2716_v0  ;;  %v2715_v20 = vadd.f32 %v2616_v11, %v6560_v42 }
 0x1b2   : > { %v5244_v6 = vpop.f32.mrf.mxu1  ;;  %v5300_v32 = vpop.f32.mrf.mxu0 }
 0x1b3   : > { %v6668_v34 = vadd.f32 %v3046_v46, %v2715_v20  ;;  %v2718_v44 = vadd.f32 %v5244_v6, %v6563_v52 }
 0x1b4   : > { %v2626_v17 = vpop.f32.mrf.mxu1  ;;  %v3056_v1 = vpop.f32.mrf.mxu0 }
 0x1b5   : > { %v6671_v3 = vadd.f32 %v5300_v32, %v2718_v44  ;;  %v2717_v8 = vadd.f32 %v2626_v17, %v6566_v12 }
 0x1b6   : > { %v5247_v30 = vpop.f32.mrf.mxu1  ;;  %v5303_v15 = vpop.f32.mrf.mxu0 }
 0x1b7   : > { %v6674_v54 = vadd.f32 %v3056_v1, %v2717_v8  ;;  %v2720_v26 = vadd.f32 %v5247_v30, %v6569_v21 }
 0x1b8   : > { %v2636_v23 = vpop.f32.mrf.mxu1  ;;  %v3066_v42 = vpop.f32.mrf.mxu0 }
 0x1b9   : > { %v6677_v58 = vadd.f32 %v5303_v15, %v2720_v26  ;;  %v2719_v57 = vadd.f32 %v2636_v23, %v6572_v50 }
 0x1ba   : > { %v5250_v49 = vpop.f32.mrf.mxu1  ;;  %v5306_v52 = vpop.f32.mrf.mxu0 }
 0x1bb   : > { %v6680_v27 = vadd.f32 %v3066_v42, %v2719_v57  ;;  %v2722_v62 = vadd.f32 %v5250_v49, %v6575_v55 }
 0x1bc   : > { %v2646_v35 = vpop.f32.mrf.mxu1  ;;  %v3076_v12 = vpop.f32.mrf.mxu0 }
 0x1bd   : > { %v6683_v5 = vadd.f32 %v5306_v52, %v2722_v62  ;;  %v2721_v19 = vadd.f32 %v2646_v35, %v6578_v36 }
 0x1be   : > { %v5253_v31 = vpop.f32.mrf.mxu1  ;;  %v5309_v21 = vpop.f32.mrf.mxu0 }
 0x1bf   : > { %v6686_v40 = vadd.f32 %v3076_v12, %v2721_v19  ;;  %v2724_v53 = vadd.f32 %v5253_v31, %v6581_v56 }
 0x1c0   : > { %v2656_v0 = vpop.f32.mrf.mxu1  ;;  %v3086_v50 = vpop.f32.mrf.mxu0 }
 0x1c1   : > { %v6689_v11 = vadd.f32 %v5309_v21, %v2724_v53  ;;  %v2723_v46 = vadd.f32 %v2656_v0, %v6584_v41 }
 0x1c2   : > { %v5256_v20 = vpop.f32.mrf.mxu1  ;;  %v5312_v55 = vpop.f32.mrf.mxu0 }
 0x1c3   : > { %v6692_v6 = vadd.f32 %v3086_v50, %v2723_v46  ;;  %v2726_v32 = vadd.f32 %v5256_v20, %v6587_v60 }
 0x1c4   : > { %v2666_v44 = vpop.f32.mrf.mxu1  ;;  %v3096_v36 = vpop.f32.mrf.mxu0 }
 0x1c5   : > { %v6695_v17 = vadd.f32 %v5312_v55, %v2726_v32  ;;  %v2725_v1 = vadd.f32 %v2666_v44, %v6590_v14 }
 0x1c6   : > { %v5259_v8 = vpop.f32.mrf.mxu1  ;;  %v5315_v56 = vpop.f32.mrf.mxu0 }
 0x1c7   : > { %v6698_v30 = vadd.f32 %v3096_v36, %v2725_v1  ;;  %v2728_v15 = vadd.f32 %v5259_v8, %v6593_v38 }
 0x1c8   : > { %v2676_v26 = vpop.f32.mrf.mxu1  ;;  %v3106_v41 = vpop.f32.mrf.mxu0 }
 0x1c9   : > { %v6701_v23 = vadd.f32 %v5315_v56, %v2728_v15  ;;  %v2727_v42 = vadd.f32 %v2676_v26, %v6596_v28  ;;  %v6717_v28 = vld [vmem:[%s6842_s2] ss:$0 sm:$0xff] }
 0x1ca   : > { %v5262_v60 = vpop.f32.mrf.mxu1  ;;  %v5318_v57 = vpop.f32.mrf.mxu0 }
 0x1cb   : > { %v6704_v49 = vadd.f32 %v3106_v41, %v2727_v42  ;;  %v2730_v52 = vadd.f32 %v5262_v60, %v6599_v7 }
 0x1cc   : > { %v2686_v14 = vpop.f32.mrf.mxu1  ;;  %v3116_v62 = vpop.f32.mrf.mxu0 }
 0x1cd   : > { %v6707_v35 = vadd.f32 %v5318_v57, %v2730_v52  ;;  %v2729_v12 = vadd.f32 %v2686_v14, %v6602_v25 }
 0x1ce   : > { %v5323_v38 = vpop.f32.mrf.mxu1  ;;  %v5379_v19 = vpop.f32.mrf.mxu0 }
 0x1cf   : > { %v6710_v31 = vadd.f32 %v3116_v62, %v2729_v12  ;;  %v3556_v21 = vadd.f32 %v5323_v38, %v6605_v43 }
 0x1d0   : > { %v3376_v53 = vpop.f32.mrf.mxu1  ;;  %v3806_v7 = vpop.f32.mrf.mxu0 }
 0x1d1   : > { %v3986_v0 = vadd.f32 %v5379_v19, %v3556_v21  ;;  %v3555_v50 = vadd.f32 %v3376_v53, %v6608_v13 }
 0x1d2   : > { %v5326_v46 = vpop.f32.mrf.mxu1  ;;  %v5382_v20 = vpop.f32.mrf.mxu0 }
 0x1d3   : > { %v4029_v25 = vadd.f32 %v6717_v28, %v3986_v0  ;;  %v3985_v55 = vadd.f32 %v3806_v7, %v3555_v50  ;;  %v3558_v32 = vadd.f32 %v5326_v46, %v6611_v51 }
 0x1d4   : > { %v3386_v43 = vpop.f32.mrf.mxu1  ;;  %v3816_v44 = vpop.f32.mrf.mxu0 }
 0x1d5   : > { %v4065_v36 = vmax.f32 %v4029_v25, 0.0  ;;  %v4028_v1 = vadd.f32 %v6717_v28, %v3985_v55  ;;  %v3988_v13 = vadd.f32 %v5382_v20, %v3558_v32  ;;  %v3557_v8 = vadd.f32 %v3386_v43, %v6614_v24 }
 0x1d6   : > { %v5329_v56 = vpop.f32.mrf.mxu1  ;;  %v5385_v15 = vpop.f32.mrf.mxu0 }
 0x1d7   : > { %4101 = vst [vmem:[%s6725_s12 + $0x8] sm:$0xff] %v4065_v36  ;;  %v4064_v51 = vmax.f32 %v4028_v1, 0.0  ;;  %v4031_v26 = vadd.f32 %v6717_v28, %v3988_v13  ;;  %v3987_v41 = vadd.f32 %v3816_v44, %v3557_v8  ;;  %v3560_v42 = vadd.f32 %v5329_v56, %v6617_v33 }
 0x1d8   : > { %v3396_v60 = vpop.f32.mrf.mxu1  ;;  %v3826_v57 = vpop.f32.mrf.mxu0 }
 0x1d9   : > { %4100 = vst [vmem:[%s6725_s12] sm:$0xff] %v4064_v51  ;;  %v4067_v52 = vmax.f32 %v4031_v26, 0.0  ;;  %v4030_v14 = vadd.f32 %v6717_v28, %v3987_v41  ;;  %v3990_v62 = vadd.f32 %v5385_v15, %v3560_v42  ;;  %v3559_v24 = vadd.f32 %v3396_v60, %v6620_v37 }
 0x1da   : > { %v5332_v12 = vpop.f32.mrf.mxu1  ;;  %v5388_v38 = vpop.f32.mrf.mxu0 }
 0x1db   : > { %4103 = vst [vmem:[%s6725_s12 + $0x18] sm:$0xff] %v4067_v52  ;;  %v4066_v19 = vmax.f32 %v4030_v14, 0.0  ;;  %v4033_v21 = vadd.f32 %v6717_v28, %v3990_v62  ;;  %v3989_v53 = vadd.f32 %v3826_v57, %v3559_v24  ;;  %v3562_v33 = vadd.f32 %v5332_v12, %v6623_v47 }
 0x1dc   : > { %v3406_v7 = vpop.f32.mrf.mxu1  ;;  %v3836_v0 = vpop.f32.mrf.mxu0 }
 0x1dd   : > { %4102 = vst [vmem:[%s6725_s12 + $0x10] sm:$0xff] %v4066_v19  ;;  %v4069_v50 = vmax.f32 %v4033_v21, 0.0  ;;  %v4032_v46 = vadd.f32 %v6717_v28, %v3989_v53  ;;  %v3992_v20 = vadd.f32 %v5388_v38, %v3562_v33  ;;  %v3561_v37 = vadd.f32 %v3406_v7, %v6626_v2 }
 0x1de   : > { %v5335_v25 = vpop.f32.mrf.mxu1  ;;  %v5391_v55 = vpop.f32.mrf.mxu0 }
 0x1df   : > { %4105 = vst [vmem:[%s6725_s12 + $0x28] sm:$0xff] %v4069_v50  ;;  %v4068_v32 = vmax.f32 %v4032_v46, 0.0  ;;  %v4035_v43 = vadd.f32 %v6717_v28, %v3992_v20  ;;  %v3991_v44 = vadd.f32 %v3836_v0, %v3561_v37  ;;  %v3564_v47 = vadd.f32 %v5335_v25, %v6629_v4 }
 0x1e0   : > { %v3416_v36 = vpop.f32.mrf.mxu1  ;;  %v3846_v1 = vpop.f32.mrf.mxu0 }
 0x1e1   : > { %4104 = vst [vmem:[%s6725_s12 + $0x20] sm:$0xff] %v4068_v32  ;;  %v4071_v13 = vmax.f32 %v4035_v43, 0.0  ;;  %v4034_v8 = vadd.f32 %v6717_v28, %v3991_v44  ;;  %v3994_v56 = vadd.f32 %v5391_v55, %v3564_v47  ;;  %v3563_v2 = vadd.f32 %v3416_v36, %v6632_v29 }
 0x1e2   : > { %v5338_v15 = vpop.f32.mrf.mxu1  ;;  %v5394_v51 = vpop.f32.mrf.mxu0 }
 0x1e3   : > { %4107 = vst [vmem:[%s6725_s12 + $0x38] sm:$0xff] %v4071_v13  ;;  %v4070_v26 = vmax.f32 %v4034_v8, 0.0  ;;  %v4037_v41 = vadd.f32 %v6717_v28, %v3994_v56  ;;  %v3993_v42 = vadd.f32 %v3846_v1, %v3563_v2  ;;  %v3566_v4 = vadd.f32 %v5338_v15, %v6635_v10 }
 0x1e4   : > { %v3426_v60 = vpop.f32.mrf.mxu1  ;;  %v3856_v57 = vpop.f32.mrf.mxu0 }
 0x1e5   : > { %4106 = vst [vmem:[%s6725_s12 + $0x30] sm:$0xff] %v4070_v26  ;;  %v4073_v52 = vmax.f32 %v4037_v41, 0.0  ;;  %v4036_v14 = vadd.f32 %v6717_v28, %v3993_v42  ;;  %v3996_v62 = vadd.f32 %v5394_v51, %v3566_v4  ;;  %v3565_v29 = vadd.f32 %v3426_v60, %v6638_v48 }
 0x1e6   : > { %v5341_v24 = vpop.f32.mrf.mxu1  ;;  %v5397_v12 = vpop.f32.mrf.mxu0 }
 0x1e7   : > { %4109 = vst [vmem:[%s6725_s12 + $0x48] sm:$0xff] %v4073_v52  ;;  %v4072_v38 = vmax.f32 %v4036_v14, 0.0  ;;  %v4039_v19 = vadd.f32 %v6717_v28, %v3996_v62  ;;  %v3995_v21 = vadd.f32 %v3856_v57, %v3565_v29  ;;  %v3568_v10 = vadd.f32 %v5341_v24, %v6641_v16 }
 0x1e8   : > { %v3436_v53 = vpop.f32.mrf.mxu1  ;;  %v3866_v33 = vpop.f32.mrf.mxu0 }
 0x1e9   : > { %4108 = vst [vmem:[%s6725_s12 + $0x40] sm:$0xff] %v4072_v38  ;;  %v4075_v7 = vmax.f32 %v4039_v19, 0.0  ;;  %v4038_v0 = vadd.f32 %v6717_v28, %v3995_v21  ;;  %v3998_v50 = vadd.f32 %v5397_v12, %v3568_v10  ;;  %v3567_v48 = vadd.f32 %v3436_v53, %v6644_v9 }
 0x1ea   : > { %v5344_v46 = vpop.f32.mrf.mxu1  ;;  %v5400_v20 = vpop.f32.mrf.mxu0 }
 0x1eb   : > { %4111 = vst [vmem:[%s6725_s12 + $0x58] sm:$0xff] %v4075_v7  ;;  %v4074_v37 = vmax.f32 %v4038_v0, 0.0  ;;  %v4041_v25 = vadd.f32 %v6717_v28, %v3998_v50  ;;  %v3997_v55 = vadd.f32 %v3866_v33, %v3567_v48  ;;  %v3570_v16 = vadd.f32 %v5344_v46, %v6647_v22 }
 0x1ec   : > { %v3446_v32 = vpop.f32.mrf.mxu1  ;;  %v3876_v43 = vpop.f32.mrf.mxu0 }
 0x1ed   : > { %4110 = vst [vmem:[%s6725_s12 + $0x50] sm:$0xff] %v4074_v37  ;;  %v4077_v44 = vmax.f32 %v4041_v25, 0.0  ;;  %v4040_v47 = vadd.f32 %v6717_v28, %v3997_v55  ;;  %v4000_v36 = vadd.f32 %v5400_v20, %v3570_v16  ;;  %v3569_v9 = vadd.f32 %v3446_v32, %v6650_v63 }
 0x1ee   : > { %v5347_v1 = vpop.f32.mrf.mxu1  ;;  %v5403_v13 = vpop.f32.mrf.mxu0 }
 0x1ef   : > { %4113 = vst [vmem:[%s6725_s12 + $0x68] sm:$0xff] %v4077_v44  ;;  %v4076_v8 = vmax.f32 %v4040_v47, 0.0  ;;  %v4043_v56 = vadd.f32 %v6717_v28, %v4000_v36  ;;  %v3999_v2 = vadd.f32 %v3876_v43, %v3569_v9  ;;  %v3572_v22 = vadd.f32 %v5347_v1, %v6653_v39 }
 0x1f0   : > { %v3456_v15 = vpop.f32.mrf.mxu1  ;;  %v3886_v51 = vpop.f32.mrf.mxu0 }
 0x1f1   : > { %4112 = vst [vmem:[%s6725_s12 + $0x60] sm:$0xff] %v4076_v8  ;;  %v4079_v26 = vmax.f32 %v4043_v56, 0.0  ;;  %v4042_v41 = vadd.f32 %v6717_v28, %v3999_v2  ;;  %v4002_v42 = vadd.f32 %v5403_v13, %v3572_v22  ;;  %v3571_v63 = vadd.f32 %v3456_v15, %v6656_v61 }
 0x1f2   : > { %v5350_v4 = vpop.f32.mrf.mxu1  ;;  %v5406_v60 = vpop.f32.mrf.mxu0 }
 0x1f3   : > { %4115 = vst [vmem:[%s6725_s12 + $0x78] sm:$0xff] %v4079_v26  ;;  %v4078_v57 = vmax.f32 %v4042_v41, 0.0  ;;  %v4045_v52 = vadd.f32 %v6717_v28, %v4002_v42  ;;  %v4001_v14 = vadd.f32 %v3886_v51, %v3571_v63  ;;  %v3574_v39 = vadd.f32 %v5350_v4, %v6659_v45 }
 0x1f4   : > { %v3466_v62 = vpop.f32.mrf.mxu1  ;;  %v3896_v29 = vpop.f32.mrf.mxu0 }
 0x1f5   : > { %4114 = vst [vmem:[%s6725_s12 + $0x70] sm:$0xff] %v4078_v57  ;;  %v4081_v24 = vmax.f32 %v4045_v52, 0.0  ;;  %v4044_v12 = vadd.f32 %v6717_v28, %v4001_v14  ;;  %v4004_v38 = vadd.f32 %v5406_v60, %v3574_v39  ;;  %v3573_v61 = vadd.f32 %v3466_v62, %v6662_v18 }
 0x1f6   : > { %v5353_v19 = vpop.f32.mrf.mxu1  ;;  %v5409_v21 = vpop.f32.mrf.mxu0 }
 0x1f7   : > { %4117 = vst [vmem:[%s6725_s12 + $0x88] sm:$0xff] %v4081_v24  ;;  %v4080_v10 = vmax.f32 %v4044_v12, 0.0  ;;  %v4047_v53 = vadd.f32 %v6717_v28, %v4004_v38  ;;  %v4003_v33 = vadd.f32 %v3896_v29, %v3573_v61  ;;  %v3576_v45 = vadd.f32 %v5353_v19, %v6665_v59 }
 0x1f8   : > { %v3476_v7 = vpop.f32.mrf.mxu1  ;;  %v3906_v0 = vpop.f32.mrf.mxu0 }
 0x1f9   : > { %4116 = vst [vmem:[%s6725_s12 + $0x80] sm:$0xff] %v4080_v10  ;;  %v4083_v50 = vmax.f32 %v4047_v53, 0.0  ;;  %v4046_v48 = vadd.f32 %v6717_v28, %v4003_v33  ;;  %v4006_v46 = vadd.f32 %v5409_v21, %v3576_v45  ;;  %v3575_v18 = vadd.f32 %v3476_v7, %v6668_v34 }
 0x1fa   : > { %v5356_v20 = vpop.f32.mrf.mxu1  ;;  %v5412_v37 = vpop.f32.mrf.mxu0 }
 0x1fb   : > { %4119 = vst [vmem:[%s6725_s12 + $0x98] sm:$0xff] %v4083_v50  ;;  %v4082_v25 = vmax.f32 %v4046_v48, 0.0  ;;  %v4049_v55 = vadd.f32 %v6717_v28, %v4006_v46  ;;  %v4005_v16 = vadd.f32 %v3906_v0, %v3575_v18  ;;  %v3578_v59 = vadd.f32 %v5356_v20, %v6671_v3 }
 0x1fc   : > { %v3486_v32 = vpop.f32.mrf.mxu1  ;;  %v3916_v43 = vpop.f32.mrf.mxu0 }
 0x1fd   : > { %4118 = vst [vmem:[%s6725_s12 + $0x90] sm:$0xff] %v4082_v25  ;;  %v4085_v44 = vmax.f32 %v4049_v55, 0.0  ;;  %v4048_v47 = vadd.f32 %v6717_v28, %v4005_v16  ;;  %v4008_v36 = vadd.f32 %v5412_v37, %v3578_v59  ;;  %v3577_v34 = vadd.f32 %v3486_v32, %v6674_v54 }
 0x1fe   : > { %v5359_v9 = vpop.f32.mrf.mxu1  ;;  %v5415_v1 = vpop.f32.mrf.mxu0 }
 0x1ff   : > { %4121 = vst [vmem:[%s6725_s12 + $0xa8] sm:$0xff] %v4085_v44  ;;  %v4084_v13 = vmax.f32 %v4048_v47, 0.0  ;;  %v4051_v8 = vadd.f32 %v6717_v28, %v4008_v36  ;;  %v4007_v56 = vadd.f32 %v3916_v43, %v3577_v34  ;;  %v3580_v3 = vadd.f32 %v5359_v9, %v6677_v58 }
 0x200   : > { %v3496_v2 = vpop.f32.mrf.mxu1  ;;  %v3926_v22 = vpop.f32.mrf.mxu0 }
 0x201   : > { %4120 = vst [vmem:[%s6725_s12 + $0xa0] sm:$0xff] %v4084_v13  ;;  %v4087_v15 = vmax.f32 %v4051_v8, 0.0  ;;  %v4050_v51 = vadd.f32 %v6717_v28, %v4007_v56  ;;  %v4010_v26 = vadd.f32 %v5415_v1, %v3580_v3  ;;  %v3579_v54 = vadd.f32 %v3496_v2, %v6680_v27 }
 0x202   : > { %v5362_v41 = vpop.f32.mrf.mxu1  ;;  %v5418_v42 = vpop.f32.mrf.mxu0 }
 0x203   : > { %4123 = vst [vmem:[%s6725_s12 + $0xb8] sm:$0xff] %v4087_v15  ;;  %v4086_v63 = vmax.f32 %v4050_v51, 0.0  ;;  %v4053_v4 = vadd.f32 %v6717_v28, %v4010_v26  ;;  %v4009_v60 = vadd.f32 %v3926_v22, %v3579_v54  ;;  %v3582_v58 = vadd.f32 %v5362_v41, %v6683_v5 }
 0x204   : > { %v3506_v57 = vpop.f32.mrf.mxu1  ;;  %v3936_v52 = vpop.f32.mrf.mxu0 }
 0x205   : > { %4122 = vst [vmem:[%s6725_s12 + $0xb0] sm:$0xff] %v4086_v63  ;;  %v4089_v14 = vmax.f32 %v4053_v4, 0.0  ;;  %v4052_v39 = vadd.f32 %v6717_v28, %v4009_v60  ;;  %v4012_v62 = vadd.f32 %v5418_v42, %v3582_v58  ;;  %v3581_v27 = vadd.f32 %v3506_v57, %v6686_v40 }
 0x206   : > { %v5365_v29 = vpop.f32.mrf.mxu1  ;;  %v5421_v24 = vpop.f32.mrf.mxu0 }
 0x207   : > { %4125 = vst [vmem:[%s6725_s12 + $0xc8] sm:$0xff] %v4089_v14  ;;  %v4088_v12 = vmax.f32 %v4052_v39, 0.0  ;;  %v4055_v38 = vadd.f32 %v6717_v28, %v4012_v62  ;;  %v4011_v61 = vadd.f32 %v3936_v52, %v3581_v27  ;;  %v3584_v5 = vadd.f32 %v5365_v29, %v6689_v11 }
 0x208   : > { %v3516_v19 = vpop.f32.mrf.mxu1  ;;  %v3946_v21 = vpop.f32.mrf.mxu0 }
 0x209   : > { %4124 = vst [vmem:[%s6725_s12 + $0xc0] sm:$0xff] %v4088_v12  ;;  %v4091_v10 = vmax.f32 %v4055_v38, 0.0  ;;  %v4054_v53 = vadd.f32 %v6717_v28, %v4011_v61  ;;  %v4014_v33 = vadd.f32 %v5421_v24, %v3584_v5  ;;  %v3583_v40 = vadd.f32 %v3516_v19, %v6692_v6 }
 0x20a   : > { %v5368_v45 = vpop.f32.mrf.mxu1  ;;  %v5424_v7 = vpop.f32.mrf.mxu0 }
 0x20b   : > { %4127 = vst [vmem:[%s6725_s12 + $0xd8] sm:$0xff] %v4091_v10  ;;  %v4090_v0 = vmax.f32 %v4054_v53, 0.0  ;;  %v4057_v50 = vadd.f32 %v6717_v28, %v4014_v33  ;;  %v4013_v48 = vadd.f32 %v3946_v21, %v3583_v40  ;;  %v3586_v11 = vadd.f32 %v5368_v45, %v6695_v17 }
 0x20c   : > { %v3526_v46 = vpop.f32.mrf.mxu1  ;;  %v3956_v18 = vpop.f32.mrf.mxu0 }
 0x20d   : > { %4126 = vst [vmem:[%s6725_s12 + $0xd0] sm:$0xff] %v4090_v0  ;;  %v4093_v20 = vmax.f32 %v4057_v50, 0.0  ;;  %v4056_v37 = vadd.f32 %v6717_v28, %v4013_v48  ;;  %v4016_v25 = vadd.f32 %v5424_v7, %v3586_v11  ;;  %v3585_v6 = vadd.f32 %v3526_v46, %v6698_v30 }
 0x20e   : > { %v5371_v55 = vpop.f32.mrf.mxu1  ;;  %v5427_v16 = vpop.f32.mrf.mxu0 }
 0x20f   : > { %4129 = vst [vmem:[%s6725_s12 + $0xe8] sm:$0xff] %v4093_v20  ;;  %v4092_v59 = vmax.f32 %v4056_v37, 0.0  ;;  %v4059_v32 = vadd.f32 %v6717_v28, %v4016_v25  ;;  %v4015_v43 = vadd.f32 %v3956_v18, %v3585_v6  ;;  %v3588_v17 = vadd.f32 %v5371_v55, %v6701_v23 }
 0x210   : > { %v3536_v44 = vpop.f32.mrf.mxu1  ;;  %v3966_v47 = vpop.f32.mrf.mxu0 }
 0x211   : > { %4128 = vst [vmem:[%s6725_s12 + $0xe0] sm:$0xff] %v4092_v59  ;;  %v4095_v36 = vmax.f32 %v4059_v32, 0.0  ;;  %v4058_v34 = vadd.f32 %v6717_v28, %v4015_v43  ;;  %v4018_v9 = vadd.f32 %v5427_v16, %v3588_v17  ;;  %v3587_v30 = vadd.f32 %v3536_v44, %v6704_v49 }
 0x212   : > { %v5374_v1 = vpop.f32.mrf.mxu1  ;;  %v5430_v13 = vpop.f32.mrf.mxu0 }
 0x213   : > { %4131 = vst [vmem:[%s6725_s12 + $0xf8] sm:$0xff] %v4095_v36  ;;  %v4094_v8 = vmax.f32 %v4058_v34, 0.0  ;;  %v4061_v56 = vadd.f32 %v6717_v28, %v4018_v9  ;;  %v4017_v3 = vadd.f32 %v3966_v47, %v3587_v30  ;;  %v3590_v23 = vadd.f32 %v5374_v1, %v6707_v35 }
 0x214   : > { %v3546_v2 = vpop.f32.mrf.mxu1  ;;  %v3976_v26 = vpop.f32.mrf.mxu0 }
 0x215   : > { %4130 = vst [vmem:[%s6725_s12 + $0xf0] sm:$0xff] %v4094_v8  ;;  %v4097_v22 = vmax.f32 %v4061_v56, 0.0  ;;  %v4060_v15 = vadd.f32 %v6717_v28, %v4017_v3  ;;  %v4020_v51 = vadd.f32 %v5430_v13, %v3590_v23  ;;  %v3589_v49 = vadd.f32 %v3546_v2, %v6710_v31 }
 0x217   : > { %4133 = vst [vmem:[%s6725_s12 + $0x108] sm:$0xff] %v4097_v22  ;;  %v4096_v54 = vmax.f32 %v4060_v15, 0.0  ;;  %v4063_v41 = vadd.f32 %v6717_v28, %v4020_v51  ;;  %v4019_v42 = vadd.f32 %v3976_v26, %v3589_v49 }
 0x219   : > { %4132 = vst [vmem:[%s6725_s12 + $0x100] sm:$0xff] %v4096_v54  ;;  %v4099_v63 = vmax.f32 %v4063_v41, 0.0  ;;  %v4062_v4 = vadd.f32 %v6717_v28, %v4019_v42 }
 0x21b   : > { %4135 = vst [vmem:[%s6725_s12 + $0x118] sm:$0xff] %v4099_v63  ;;  %v4098_v35 = vmax.f32 %v4062_v4, 0.0 }
 0x21d   : > { %4134 = vst [vmem:[%s6725_s12 + $0x110] sm:$0xff] %v4098_v35 }
 0x21e PF: > { %s13_s14 = sadd.s32 1, %s5481_s14   ;;  %s6844_s12 = smov %s5477_s13 }
 0x21f   : > { %p10_p5 = scmp.ge.s32.totalorder %s13_s14, 4   ;;  %s6845_s13 = smov %s6847_s15 }
 0x221   :  { %12 = sbr.rel (!%p10_p5) target bundleno = 2 (0x2), region = 76 }

</bundles_post_ra>
